<compile_context>
chip_gen: v7x
topology: tpu7x:2x2x1
jax: 0.10.0
libtpu: 0.0.40
codegen_flags: <defaults>
</compile_context>

<pallas_src>
import functools

import jax
import jax.numpy as jnp
import numpy as np
from jax import lax
from jax.experimental import pallas as pl
from jax.experimental.pallas import tpu as pltpu


def sa_layer_kernel(x_ref, wqkv_ref, bv_ref, wt_ref, bt_ref, gamma_ref,
                    beta_ref, o_ref, *, cq, matmul_dtype, qk_matmul_dtype):
    # x_ref:     (B, C, N)    channels-first input (N = lane dim)
    # wqkv_ref:  (Cq + C, C)  fused q/k (shared) + v weight, pre-cast to qk dtype
    # wt_ref:    (C, C)       trans_conv weight, pre-cast to matmul_dtype
    # bv/bt/gamma/beta_ref: (C, 1) f32;   o_ref: (B, C, N)
    B, C, N = x_ref.shape
    x = x_ref[...]                                               # (B, C, N) f32

    # Fold batch into lanes: (C, B*N) via static 128-aligned lane-offset copies.
    x2 = jnp.concatenate([x[b] for b in range(B)], axis=-1)      # (C, B*N)

    # --- fused q/k + v projection: one (Cq+C, C) @ (C, B*N) MXU pass ---------
    proj = jnp.dot(wqkv_ref[...], x2.astype(qk_matmul_dtype),
                   preferred_element_type=jnp.float32)           # (Cq+C, B*N)
    qk2 = proj[:cq]                                              # (Cq, B*N)
    xv2 = proj[cq:] + bv_ref[...]                                # (C,  B*N)

    # --- per-batch attention (B is a small static constant) ------------------
    xr_parts = []
    for b in range(B):
        sl = slice(b * N, (b + 1) * N)
        qk_b = qk2[:, sl].astype(qk_matmul_dtype)                # (Cq, N)
        # energy[i, j] = <qk[:, i], qk[:, j]> : contract Cq directly
        # (MXU consumes the transposed LHS natively -> no XLU transpose).
        energy = lax.dot_general(qk_b, qk_b, (((0,), (0,)), ((), ())),
                                 preferred_element_type=jnp.float32)  # (N, N)

        # Softmax over keys, kept f32 (v5e has no bf16 VPU/EUP; exp amplifies).
        # TODO(synk): on v6e/v7x at production N, run this N^2 elementwise
        # chain in bf16 (keep max/sum accumulations f32) to halve VPU/EUP time.
        e = jnp.exp(energy - jnp.max(energy, axis=-1, keepdims=True))
        inv_row = pl.reciprocal(jnp.sum(e, axis=-1, keepdims=True),
                                approx=True)                     # (N, 1)
        # SPCT double normalization: query-dim (column) sum as an MXU matvec,
        # keeping the N^2 cross-sublane reduce off the XLU.
        colsum = lax.dot_general(inv_row, e, (((0,), (0,)), ((), ())),
                                 preferred_element_type=jnp.float32)  # (1, N)
        inv_col = pl.reciprocal(1e-9 + colsum, approx=True)      # (1, N)

        # Both normalizations fused into the cast feeding the x_r matmul.
        att = (e * inv_row * inv_col).astype(matmul_dtype)       # (N, N)
        xv_b = xv2[:, sl].astype(matmul_dtype)                   # (C, N)
        xr_parts.append(jnp.dot(xv_b, att,
                                preferred_element_type=jnp.float32))  # (C, N)
    xr2 = jnp.concatenate(xr_parts, axis=-1)                     # (C, B*N)

    # --- trans_conv(x - x_r): (C, C) @ (C, B*N), bf16 ops / f32 accumulate ---
    d2 = (x2 - xr2).astype(matmul_dtype)
    t2 = jnp.dot(wt_ref[...], d2,
                 preferred_element_type=jnp.float32) + bt_ref[...]    # (C, B*N)

    # --- training-mode BatchNorm1d over (batch, points) = folded lane dim ----
    mean = jnp.mean(t2, axis=-1, keepdims=True)                  # (C, 1)
    var = jnp.mean(jnp.square(t2 - mean), axis=-1, keepdims=True)
    y2 = jnp.maximum((t2 - mean) * lax.rsqrt(var + 1e-5) * gamma_ref[...]
                     + beta_ref[...], 0.0)                       # (C, B*N)

    # --- residual + un-fold: per-batch 128-lane-dense (C, N) stores ----------
    for b in range(B):
        o_ref[b] = (x[b] + y2[:, b * N:(b + 1) * N]).astype(o_ref.dtype)


def sa_layer(x, wqk, wv, bv, wt, bt, gamma, beta, *,
             matmul_dtype=jnp.bfloat16, qk_matmul_dtype=jnp.bfloat16):
    """SA_Layer forward.  x: (B, C, N) float32, PyTorch-style channels-first.

    wqk: (C//4, C) shared q/k conv weight; wv, wt: (C, C); bv, bt, gamma, beta: (C,).
    matmul_dtype:    operand dtype for x_v@attention and trans_conv.
    qk_matmul_dtype: operand dtype for the fused projection and energy matmuls
                     (the ones whose rounding is amplified by exp); keep Cq a
                     multiple of 16 when bf16 so the proj row slices stay
                     sublane-aligned.
    """
    B, C, N = x.shape
    cq = wqk.shape[0]

    # Fuse the shared q/k projection and the v projection into one weight.
    wqkv = jnp.concatenate([wqk, wv], axis=0).astype(qk_matmul_dtype)  # (Cq+C, C)
    wt_mm = wt.astype(matmul_dtype)

    flops = (2 * (cq + C) * C * B * N        # fused projection
             + 2 * B * N * N * cq            # energy
             + 2 * B * N * N                 # column-sum matvec
             + 2 * B * C * N * N             # x_v @ attention
             + 2 * C * C * B * N)            # trans_conv
    transcendentals = B * N * N + 2 * B * N + C        # exp + 2 recips + rsqrt
    args = (x, wqkv, bv.reshape(C, 1), wt_mm, bt.reshape(C, 1),
            gamma.reshape(C, 1), beta.reshape(C, 1))
    bytes_accessed = int(sum(int(a.size) * a.dtype.itemsize for a in args)
                         + B * C * N * x.dtype.itemsize)

    vmem = pl.BlockSpec(memory_space=pltpu.MemorySpace.VMEM)
    kernel = functools.partial(sa_layer_kernel, cq=cq,
                               matmul_dtype=matmul_dtype,
                               qk_matmul_dtype=qk_matmul_dtype)

    # TODO(synk): for production N (>= ~1k) add a grid over query tiles / batch
    # ("parallel" axes, key/reduction axis last "arbitrary") with a two-pass
    # partial-stats BatchNorm and column-sum accumulation, and derive the query
    # tile size from pltpu.get_tpu_info().vmem_capacity_bytes (v7x has only
    # 64 MiB VMEM, so full (B,N,N) slabs must be tiled there).  At B=2, N=128
    # the gridless form is faster (per-step overhead dominates).
    return pl.pallas_call(
        kernel,
        out_shape=jax.ShapeDtypeStruct((B, C, N), x.dtype),
        in_specs=[vmem] * 7,
        out_specs=vmem,
        # Output has x's shape/dtype and x is fully in VMEM before the final
        # store, so callers that donate x under jit reuse its HBM buffer.
        input_output_aliases={0: 0},
        cost_estimate=pl.CostEstimate(flops=int(flops),
                                      transcendentals=int(transcendentals),
                                      bytes_accessed=bytes_accessed),
    )(*args)


def sa_layer_ref(x, wqk, wv, bv, wt, bt, gamma, beta):
    """Pure-JAX f32 reference mirroring the PyTorch forward (channels-first)."""
    xk = jnp.einsum('qc,bcn->bqn', wqk, x)                       # (B, Cq, N)
    xq = jnp.transpose(xk, (0, 2, 1))                            # (B, N, Cq)
    xv = jnp.einsum('oc,bcn->bon', wv, x) + bv[None, :, None]
    energy = jnp.einsum('biq,bqj->bij', xq, xk)
    att = jax.nn.softmax(energy, axis=-1)
    att = att / (1e-9 + jnp.sum(att, axis=1, keepdims=True))
    xr = jnp.einsum('bcn,bnm->bcm', xv, att)
    d = x - xr
    t = jnp.einsum('oc,bcn->bon', wt, d) + bt[None, :, None]
    mean = jnp.mean(t, axis=(0, 2), keepdims=True)
    var = jnp.mean((t - mean) ** 2, axis=(0, 2), keepdims=True)
    t_hat = (t - mean) / jnp.sqrt(var + 1e-5)
    return x + jax.nn.relu(t_hat * gamma[None, :, None] + beta[None, :, None])


if __name__ == "__main__":
    B, C, N = 2, 64, 128            # channels divisible by 4 (Cq = 16), N = lane width
    key = jax.random.PRNGKey(0)
    ks = jax.random.split(key, 8)

    x = jax.random.normal(ks[0], (B, C, N), jnp.float32)
    wqk = jax.random.normal(ks[1], (C // 4, C), jnp.float32) * 0.1   # shared q/k weight
    wv = jax.random.normal(ks[2], (C, C), jnp.float32) * 0.1
    bv = jax.random.normal(ks[3], (C,), jnp.float32) * 0.1
    wt = jax.random.normal(ks[4], (C, C), jnp.float32) * 0.1
    bt = jax.random.normal(ks[5], (C,), jnp.float32) * 0.1
    gamma = 1.0 + 0.1 * jax.random.normal(ks[6], (C,), jnp.float32)  # BN weight
    beta = 0.1 * jax.random.normal(ks[7], (C,), jnp.float32)         # BN bias

    ref = sa_layer_ref(x, wqk, wv, bv, wt, bt, gamma, beta)

    # Fast path (default): bf16 operands on ALL MXU matmuls (incl. projection +
    # energy) + approx reciprocals.  Looser tolerance: bf16 operand rounding is
    # amplified by exp in the softmax, so only a ~1e-1 agreement is guaranteed.
    out = jax.block_until_ready(sa_layer(x, wqk, wv, bv, wt, bt, gamma, beta))
    np.testing.assert_allclose(np.asarray(out), np.asarray(ref),
                               rtol=1e-1, atol=1e-1)

    # f32 q/k-path variant (projection + energy in f32, heavy matmuls bf16):
    # same accuracy contract as the previously validated fast path.
    out_qk32 = jax.block_until_ready(
        sa_layer(x, wqk, wv, bv, wt, bt, gamma, beta,
                 qk_matmul_dtype=jnp.float32))
    np.testing.assert_allclose(np.asarray(out_qk32), np.asarray(ref),
                               rtol=5e-2, atol=5e-2)

    # All-f32 matmul variant: tight structural check (only approx recips differ).
    out_f32 = jax.block_until_ready(
        sa_layer(x, wqk, wv, bv, wt, bt, gamma, beta,
                 matmul_dtype=jnp.float32, qk_matmul_dtype=jnp.float32))
    np.testing.assert_allclose(np.asarray(out_f32), np.asarray(ref),
                               rtol=1e-2, atol=1e-2)

    print("KERNEL_OK")
</pallas_src>

<mosaic_0001>
module attributes {stable_mosaic.version = 11 : i64} {
  func.func @sa_layer_kernel(%arg0: memref<2x64x128xf32, #tpu.memory_space<vmem>>, %arg1: memref<80x64xbf16, #tpu.memory_space<vmem>>, %arg2: memref<64x1xf32, #tpu.memory_space<vmem>>, %arg3: memref<64x64xbf16, #tpu.memory_space<vmem>>, %arg4: memref<64x1xf32, #tpu.memory_space<vmem>>, %arg5: memref<64x1xf32, #tpu.memory_space<vmem>>, %arg6: memref<64x1xf32, #tpu.memory_space<vmem>>, %arg7: memref<2x64x128xf32, #tpu.memory_space<vmem>>) attributes {dimension_semantics = [], scalar_prefetch = 0 : i64, scratch_operands = 0 : i64, tpu.core_type = #tpu.core_type<tc>} {
    %c0 = arith.constant 0 : index
    %c0_0 = arith.constant 0 : index
    %c0_1 = arith.constant 0 : index
    %0 = vector.load %arg0[%c0, %c0_0, %c0_1] : memref<2x64x128xf32, #tpu.memory_space<vmem>>, vector<2x64x128xf32>
    %1 = vector.extract_strided_slice %0 {offsets = [0, 0, 0], sizes = [1, 64, 128], strides = [1, 1, 1]} : vector<2x64x128xf32> to vector<1x64x128xf32>
    %2 = vector.shape_cast %1 : vector<1x64x128xf32> to vector<64x128xf32>
    %3 = vector.extract_strided_slice %0 {offsets = [1, 0, 0], sizes = [1, 64, 128], strides = [1, 1, 1]} : vector<2x64x128xf32> to vector<1x64x128xf32>
    %4 = vector.shape_cast %3 : vector<1x64x128xf32> to vector<64x128xf32>
    %5 = tpu.concatenate %2, %4 in 1 : vector<64x128xf32>, vector<64x128xf32> -> vector<64x256xf32>
    %c0_2 = arith.constant 0 : index
    %c0_3 = arith.constant 0 : index
    %6 = vector.load %arg1[%c0_2, %c0_3] : memref<80x64xbf16, #tpu.memory_space<vmem>>, vector<80x64xbf16>
    %7 = arith.truncf %5 : vector<64x256xf32> to vector<64x256xbf16>
    %cst = arith.constant dense<0.000000e+00> : vector<80x256xf32>
    %8 = tpu.matmul %6, %7, %cst {dimension_numbers = #tpu.dot_dimension_numbers<[1], [0], [0], [1], [0, 0, 1, 1], [], []>} : vector<80x64xbf16>, vector<64x256xbf16>, vector<80x256xf32> -> vector<80x256xf32>
    %9 = vector.extract_strided_slice %8 {offsets = [0, 0], sizes = [16, 256], strides = [1, 1]} : vector<80x256xf32> to vector<16x256xf32>
    %10 = vector.extract_strided_slice %8 {offsets = [16, 0], sizes = [64, 256], strides = [1, 1]} : vector<80x256xf32> to vector<64x256xf32>
    %c0_4 = arith.constant 0 : index
    %c0_5 = arith.constant 0 : index
    %11 = vector.load %arg2[%c0_4, %c0_5] : memref<64x1xf32, #tpu.memory_space<vmem>>, vector<64x1xf32>
    %12 = vector.broadcast %11 : vector<64x1xf32> to vector<64x256xf32>
    %13 = arith.addf %10, %12 : vector<64x256xf32>
    %14 = vector.extract_strided_slice %9 {offsets = [0, 0], sizes = [16, 128], strides = [1, 1]} : vector<16x256xf32> to vector<16x128xf32>
    %15 = arith.truncf %14 : vector<16x128xf32> to vector<16x128xbf16>
    %cst_6 = arith.constant dense<0.000000e+00> : vector<128x128xf32>
    %16 = tpu.matmul %15, %15, %cst_6 {dimension_numbers = #tpu.dot_dimension_numbers<[0], [0], [1], [1], [0, 1, 1, 1], [], []>} : vector<16x128xbf16>, vector<16x128xbf16>, vector<128x128xf32> -> vector<128x128xf32>
    %cst_7 = arith.constant dense<0xFF800000> : vector<128xf32>
    %17 = vector.multi_reduction <maximumf>, %16, %cst_7 [1] : vector<128x128xf32> to vector<128xf32>
    %18 = vector.shape_cast %17 : vector<128xf32> to vector<128x1xf32>
    %19 = vector.broadcast %18 : vector<128x1xf32> to vector<128x128xf32>
    %20 = arith.subf %16, %19 : vector<128x128xf32>
    %21 = math.exp %20 : vector<128x128xf32>
    %cst_8 = arith.constant dense<0.000000e+00> : vector<128xf32>
    %22 = vector.multi_reduction <add>, %21, %cst_8 [1] : vector<128x128xf32> to vector<128xf32>
    %23 = vector.shape_cast %22 : vector<128xf32> to vector<128x1xf32>
    %24 = tpu.reciprocal %23 {approx = true} : vector<128x1xf32> -> vector<128x1xf32>
    %cst_9 = arith.constant dense<0.000000e+00> : vector<1x128xf32>
    %25 = tpu.matmul %24, %21, %cst_9 {dimension_numbers = #tpu.dot_dimension_numbers<[0], [0], [1], [1], [0, 1, 1, 1], [], []>} : vector<128x1xf32>, vector<128x128xf32>, vector<1x128xf32> -> vector<1x128xf32>
    %cst_10 = arith.constant 9.99999971E-10 : f32
    %26 = vector.broadcast %cst_10 : f32 to vector<1x128xf32>
    %27 = arith.addf %26, %25 : vector<1x128xf32>
    %28 = tpu.reciprocal %27 {approx = true} : vector<1x128xf32> -> vector<1x128xf32>
    %29 = vector.broadcast %24 : vector<128x1xf32> to vector<128x128xf32>
    %30 = arith.mulf %21, %29 : vector<128x128xf32>
    %31 = vector.broadcast %28 : vector<1x128xf32> to vector<128x128xf32>
    %32 = arith.mulf %30, %31 : vector<128x128xf32>
    %33 = arith.truncf %32 : vector<128x128xf32> to vector<128x128xbf16>
    %34 = vector.extract_strided_slice %13 {offsets = [0, 0], sizes = [64, 128], strides = [1, 1]} : vector<64x256xf32> to vector<64x128xf32>
    %35 = arith.truncf %34 : vector<64x128xf32> to vector<64x128xbf16>
    %cst_11 = arith.constant dense<0.000000e+00> : vector<64x128xf32>
    %36 = tpu.matmul %35, %33, %cst_11 {dimension_numbers = #tpu.dot_dimension_numbers<[1], [0], [0], [1], [0, 0, 1, 1], [], []>} : vector<64x128xbf16>, vector<128x128xbf16>, vector<64x128xf32> -> vector<64x128xf32>
    %37 = vector.extract_strided_slice %9 {offsets = [0, 128], sizes = [16, 128], strides = [1, 1]} : vector<16x256xf32> to vector<16x128xf32>
    %38 = arith.truncf %37 : vector<16x128xf32> to vector<16x128xbf16>
    %cst_12 = arith.constant dense<0.000000e+00> : vector<128x128xf32>
    %39 = tpu.matmul %38, %38, %cst_12 {dimension_numbers = #tpu.dot_dimension_numbers<[0], [0], [1], [1], [0, 1, 1, 1], [], []>} : vector<16x128xbf16>, vector<16x128xbf16>, vector<128x128xf32> -> vector<128x128xf32>
    %cst_13 = arith.constant dense<0xFF800000> : vector<128xf32>
    %40 = vector.multi_reduction <maximumf>, %39, %cst_13 [1] : vector<128x128xf32> to vector<128xf32>
    %41 = vector.shape_cast %40 : vector<128xf32> to vector<128x1xf32>
    %42 = vector.broadcast %41 : vector<128x1xf32> to vector<128x128xf32>
    %43 = arith.subf %39, %42 : vector<128x128xf32>
    %44 = math.exp %43 : vector<128x128xf32>
    %cst_14 = arith.constant dense<0.000000e+00> : vector<128xf32>
    %45 = vector.multi_reduction <add>, %44, %cst_14 [1] : vector<128x128xf32> to vector<128xf32>
    %46 = vector.shape_cast %45 : vector<128xf32> to vector<128x1xf32>
    %47 = tpu.reciprocal %46 {approx = true} : vector<128x1xf32> -> vector<128x1xf32>
    %cst_15 = arith.constant dense<0.000000e+00> : vector<1x128xf32>
    %48 = tpu.matmul %47, %44, %cst_15 {dimension_numbers = #tpu.dot_dimension_numbers<[0], [0], [1], [1], [0, 1, 1, 1], [], []>} : vector<128x1xf32>, vector<128x128xf32>, vector<1x128xf32> -> vector<1x128xf32>
    %cst_16 = arith.constant 9.99999971E-10 : f32
    %49 = vector.broadcast %cst_16 : f32 to vector<1x128xf32>
    %50 = arith.addf %49, %48 : vector<1x128xf32>
    %51 = tpu.reciprocal %50 {approx = true} : vector<1x128xf32> -> vector<1x128xf32>
    %52 = vector.broadcast %47 : vector<128x1xf32> to vector<128x128xf32>
    %53 = arith.mulf %44, %52 : vector<128x128xf32>
    %54 = vector.broadcast %51 : vector<1x128xf32> to vector<128x128xf32>
    %55 = arith.mulf %53, %54 : vector<128x128xf32>
    %56 = arith.truncf %55 : vector<128x128xf32> to vector<128x128xbf16>
    %57 = vector.extract_strided_slice %13 {offsets = [0, 128], sizes = [64, 128], strides = [1, 1]} : vector<64x256xf32> to vector<64x128xf32>
    %58 = arith.truncf %57 : vector<64x128xf32> to vector<64x128xbf16>
    %cst_17 = arith.constant dense<0.000000e+00> : vector<64x128xf32>
    %59 = tpu.matmul %58, %56, %cst_17 {dimension_numbers = #tpu.dot_dimension_numbers<[1], [0], [0], [1], [0, 0, 1, 1], [], []>} : vector<64x128xbf16>, vector<128x128xbf16>, vector<64x128xf32> -> vector<64x128xf32>
    %60 = tpu.concatenate %36, %59 in 1 : vector<64x128xf32>, vector<64x128xf32> -> vector<64x256xf32>
    %61 = arith.subf %5, %60 : vector<64x256xf32>
    %62 = arith.truncf %61 : vector<64x256xf32> to vector<64x256xbf16>
    %c0_18 = arith.constant 0 : index
    %c0_19 = arith.constant 0 : index
    %63 = vector.load %arg3[%c0_18, %c0_19] : memref<64x64xbf16, #tpu.memory_space<vmem>>, vector<64x64xbf16>
    %cst_20 = arith.constant dense<0.000000e+00> : vector<64x256xf32>
    %64 = tpu.matmul %63, %62, %cst_20 {dimension_numbers = #tpu.dot_dimension_numbers<[1], [0], [0], [1], [0, 0, 1, 1], [], []>} : vector<64x64xbf16>, vector<64x256xbf16>, vector<64x256xf32> -> vector<64x256xf32>
    %c0_21 = arith.constant 0 : index
    %c0_22 = arith.constant 0 : index
    %65 = vector.load %arg4[%c0_21, %c0_22] : memref<64x1xf32, #tpu.memory_space<vmem>>, vector<64x1xf32>
    %66 = vector.broadcast %65 : vector<64x1xf32> to vector<64x256xf32>
    %67 = arith.addf %64, %66 : vector<64x256xf32>
    %cst_23 = arith.constant dense<0.000000e+00> : vector<64xf32>
    %68 = vector.multi_reduction <add>, %67, %cst_23 [1] : vector<64x256xf32> to vector<64xf32>
    %69 = vector.shape_cast %68 : vector<64xf32> to vector<64x1xf32>
    %cst_24 = arith.constant 2.560000e+02 : f32
    %70 = vector.broadcast %cst_24 : f32 to vector<64x1xf32>
    %71 = arith.divf %69, %70 : vector<64x1xf32>
    %72 = vector.broadcast %71 : vector<64x1xf32> to vector<64x256xf32>
    %73 = arith.subf %67, %72 : vector<64x256xf32>
    %74 = arith.mulf %73, %73 : vector<64x256xf32>
    %cst_25 = arith.constant dense<0.000000e+00> : vector<64xf32>
    %75 = vector.multi_reduction <add>, %74, %cst_25 [1] : vector<64x256xf32> to vector<64xf32>
    %76 = vector.shape_cast %75 : vector<64xf32> to vector<64x1xf32>
    %cst_26 = arith.constant 2.560000e+02 : f32
    %77 = vector.broadcast %cst_26 : f32 to vector<64x1xf32>
    %78 = arith.divf %76, %77 : vector<64x1xf32>
    %79 = vector.broadcast %71 : vector<64x1xf32> to vector<64x256xf32>
    %80 = arith.subf %67, %79 : vector<64x256xf32>
    %cst_27 = arith.constant 9.99999974E-6 : f32
    %81 = vector.broadcast %cst_27 : f32 to vector<64x1xf32>
    %82 = arith.addf %78, %81 : vector<64x1xf32>
    %83 = math.rsqrt %82 : vector<64x1xf32>
    %84 = vector.broadcast %83 : vector<64x1xf32> to vector<64x256xf32>
    %85 = arith.mulf %80, %84 : vector<64x256xf32>
    %c0_28 = arith.constant 0 : index
    %c0_29 = arith.constant 0 : index
    %86 = vector.load %arg5[%c0_28, %c0_29] : memref<64x1xf32, #tpu.memory_space<vmem>>, vector<64x1xf32>
    %87 = vector.broadcast %86 : vector<64x1xf32> to vector<64x256xf32>
    %88 = arith.mulf %85, %87 : vector<64x256xf32>
    %c0_30 = arith.constant 0 : index
    %c0_31 = arith.constant 0 : index
    %89 = vector.load %arg6[%c0_30, %c0_31] : memref<64x1xf32, #tpu.memory_space<vmem>>, vector<64x1xf32>
    %90 = vector.broadcast %89 : vector<64x1xf32> to vector<64x256xf32>
    %91 = arith.addf %88, %90 : vector<64x256xf32>
    %cst_32 = arith.constant 0.000000e+00 : f32
    %92 = vector.broadcast %cst_32 : f32 to vector<64x256xf32>
    %93 = arith.maximumf %91, %92 : vector<64x256xf32>
    %94 = vector.extract_strided_slice %0 {offsets = [0, 0, 0], sizes = [1, 64, 128], strides = [1, 1, 1]} : vector<2x64x128xf32> to vector<1x64x128xf32>
    %95 = vector.shape_cast %94 : vector<1x64x128xf32> to vector<64x128xf32>
    %96 = vector.extract_strided_slice %93 {offsets = [0, 0], sizes = [64, 128], strides = [1, 1]} : vector<64x256xf32> to vector<64x128xf32>
    %97 = arith.addf %95, %96 : vector<64x128xf32>
    %c0_33 = arith.constant 0 : index
    %c0_34 = arith.constant 0 : index
    %c0_35 = arith.constant 0 : index
    %98 = vector.load %arg7[%c0_33, %c0_34, %c0_35] : memref<2x64x128xf32, #tpu.memory_space<vmem>>, vector<1x64x128xf32>
    %99 = vector.shape_cast %98 : vector<1x64x128xf32> to vector<64x128xf32>
    %100 = vector.shape_cast %97 : vector<64x128xf32> to vector<1x64x128xf32>
    tpu.vector_store %arg7[%c0_33, %c0_34, %c0_35], %100 {strides = array<i32>} : memref<2x64x128xf32, #tpu.memory_space<vmem>>, vector<1x64x128xf32>,
    %101 = vector.extract_strided_slice %0 {offsets = [1, 0, 0], sizes = [1, 64, 128], strides = [1, 1, 1]} : vector<2x64x128xf32> to vector<1x64x128xf32>
    %102 = vector.shape_cast %101 : vector<1x64x128xf32> to vector<64x128xf32>
    %103 = vector.extract_strided_slice %93 {offsets = [0, 128], sizes = [64, 128], strides = [1, 1]} : vector<64x256xf32> to vector<64x128xf32>
    %104 = arith.addf %102, %103 : vector<64x128xf32>
    %c1 = arith.constant 1 : index
    %c0_36 = arith.constant 0 : index
    %c0_37 = arith.constant 0 : index
    %105 = vector.load %arg7[%c1, %c0_36, %c0_37] : memref<2x64x128xf32, #tpu.memory_space<vmem>>, vector<1x64x128xf32>
    %106 = vector.shape_cast %105 : vector<1x64x128xf32> to vector<64x128xf32>
    %107 = vector.shape_cast %104 : vector<64x128xf32> to vector<1x64x128xf32>
    tpu.vector_store %arg7[%c1, %c0_36, %c0_37], %107 {strides = array<i32>} : memref<2x64x128xf32, #tpu.memory_space<vmem>>, vector<1x64x128xf32>,
    return
  }
}

</mosaic_0001>

<bundles_post_ra>
// kernel: tpu_custom_call.1
= control target key start
LH: loop header
LB: loop body
LE: loop exit
PB: predicated region body
PF: predicated region fallthrough
CT: control target
= control target key end

     0   :  { %12 = vsyncpa [#allocation3], 0  ;;  %s3212_s0 = inlined_call_operand.hbm [shape: f32[2,64,128], index: 0, kind: input, shape index: {}, may-alias: {0,7}]   ;;  %s3213_s1 = inlined_call_operand.vmem [shape: bf16[80,64], index: 1, kind: input, shape index: {}]   ;;  %s3214_s2 = inlined_call_operand.vmem [shape: f32[64,1], index: 2, kind: input, shape index: {}]   ;;  %s3215_s3 = inlined_call_operand.vmem [shape: bf16[64,64], index: 3, kind: input, shape index: {}]   ;;  %s3216_s4 = inlined_call_operand.vmem [shape: f32[64,1], index: 4, kind: input, shape index: {}]   ;;  %s3217_s5 = inlined_call_operand.vmem [shape: f32[64,1], index: 5, kind: input, shape index: {}]   ;;  %s3218_s6 = inlined_call_operand.vmem [shape: f32[64,1], index: 6, kind: input, shape index: {}]   ;;  %s3219_s7 = inlined_call_operand.hbm [shape: f32[2,64,128], index: 7, kind: output, shape index: {}, may-alias: {0,7}]  }
   0x1   :  { %13 = vsyncpa [#allocation4], 0  ;;  %s2288_s24 = smov [#allocation2]   ;;  %s2240_s28 = scalar_lea.hbm %s3212_s0, 2048 }
   0x2   :  { %s19_s25 = sshll.u32 %s2288_s24, 4  ;;  %p2241_p0 = scmp.ne.s32.totalorder %s3212_s0, %s2240_s28  ;;  %s20_s25 = int_to_ptr.vmem [resolvable:$true] %s19_s25 }
   0x3   :  { %p2244_p1 = scmp.lt.u32.totalorder %s2240_s28, %s3212_s0 }
   0x5   :  { %p2246_p2 = pnand %p2244_p1, %p2241_p0 }
   0x7   :  { %2249 = shalt.err (!%p2246_p2)
}
   0x8   :  { %s2250_s10 = scalar_lea.vmem %s20_s25, 2048  ;;  %p2255_p4 = scmp.lt.s32.totalorder %s20_s25, %s20_s25 }
   0x9   :  { %p2251_p3 = scmp.ne.s32.totalorder %s20_s25, %s2250_s10  ;;  %p2256_p5 = scmp.lt.s32.totalorder %s2250_s10, %s2250_s10 }
   0xb   :  { %p2257_p6 = por %p2256_p5, %p2255_p4 }
   0xd   :  { %p2258_p7 = pnand %p2257_p6, %p2251_p3 }
   0xf   :  { %2261 = shalt.err (!%p2258_p7)
}
  0x10   :  { %s2289_s11 = smov 128   ;;  %s2290_s12 = smov 8  }
  0x11   :  { %25 = dma.hbm_to_vmem [thread:$0]  %s3212_s0, 2048, %s20_s25, [#allocation3], %s2289_s11, %s2289_s11, %s2290_s12  }
  0x12   :  { %2284 = dma.done.wait [#allocation3], 2048  }
  0x13   :  { %2285 = vsyncadd [#allocation3], 4294965248  ;;  %v2291_v0 = vmov 0   ;;  %v50_v1 = vld [vmem:[#allocation2 + $0x40] sm:$0xff]  ;;  %v51_v2 = vld [vmem:[#allocation2 + $0x48] sm:$0xff]  ;;  %vm101_vm0 = vcmask 523264  }
  0x14   :  { %149 = vmatprep.mubr.bf16.mxu0 %v2291_v0  ;;  %v42_v3 = vld [vmem:[#allocation2] sm:$0xff]  ;;  %v69_v4 = vpack.c.bf16 %v51_v2, %v50_v1  ;;  %v43_v5 = vld [vmem:[#allocation2 + $0x8] sm:$0xff]  ;;  %v52_v6 = vld [vmem:[#allocation2 + $0x50] sm:$0xff]  ;;  %vm281_vm1 = vcmask 130048   ;;  %v2292_v56 = vmov 0.0|0.0   ;;  %vm2293_vm2 = vmmov 0  }
  0x15   :  { %v53_v7 = vld [vmem:[#allocation2 + $0x58] sm:$0xff]  ;;  %v68_v8 = vpack.c.bf16 %v43_v5, %v42_v3  ;;  %v44_v10 = vld [vmem:[#allocation2 + $0x10] sm:$0xff]  ;;  %v54_v12 = vld [vmem:[#allocation2 + $0x60] sm:$0xff] }
  0x16   :  { %v71_v9 = vpack.c.bf16 %v53_v7, %v52_v6  ;;  %v45_v11 = vld [vmem:[#allocation2 + $0x18] sm:$0xff]  ;;  %117 = vmatprep.subr.bf16.mxu0 %v69_v4  ;;  %v55_v13 = vld [vmem:[#allocation2 + $0x68] sm:$0xff]  ;;  %v46_v15 = vld [vmem:[#allocation2 + $0x20] sm:$0xff] }
  0x17   :  { %118 = vmatpush1.bf16.msra.mxu0 %v68_v8  ;;  %v70_v14 = vpack.c.bf16 %v45_v11, %v44_v10  ;;  %v47_v16 = vld [vmem:[#allocation2 + $0x28] sm:$0xff]  ;;  %v73_v17 = vpack.c.bf16 %v55_v13, %v54_v12  ;;  %v56_v18 = vld [vmem:[#allocation2 + $0x70] sm:$0xff]  ;;  %v57_v19 = vld [vmem:[#allocation2 + $0x78] sm:$0xff] }
  0x18   :  { %119 = vmatprep.subr.bf16.mxu0 %v71_v9  ;;  %v48_v20 = vld [vmem:[#allocation2 + $0x30] sm:$0xff]  ;;  %v49_v21 = vld [vmem:[#allocation2 + $0x38] sm:$0xff]  ;;  %v72_v22 = vpack.c.bf16 %v47_v16, %v46_v15  ;;  %v75_v23 = vpack.c.bf16 %v57_v19, %v56_v18  ;;  %v2067_v25 = vld [vmem:[%s3213_s1] sm:$0xff]  }
  0x19   :  { %v74_v24 = vpack.c.bf16 %v49_v21, %v48_v20 }
  0x1b   :  { %120 = vmatpush1.bf16.msra.mxu0 %v70_v14 }
  0x1c   :  { %121 = vmatprep.subr.bf16.mxu0 %v73_v17 }
  0x1f   :  { %122 = vmatpush1.bf16.msra.mxu0 %v72_v22 }
  0x20   :  { %123 = vmatprep.subr.bf16.mxu0 %v75_v23 }
  0x23   :  { %124 = vmatpush1.bf16.msra.mxu0 %v74_v24 }
  0x26   :  { %1742 = vmatmul.mubr.msk.bf16.vlgmr.msra.gmra.mrb[0].mxu0 %vm101_vm0, %v2067_v25 }
  0x27   :  { %159 = vmatprep.mubr.bf16.mxu0 %v2291_v0 }
  0xf9   :  { %v151_v26 = vpop.f32.mrb[0].mxu0 }
  0xfa   :  { %v153_v27 = vpop.f32.mrb[1].mxu0 }
  0xfb   :  { %v155_v28 = vpop.f32.mrb[2].mxu0 }
  0xfc   :  { %v264_v29 = vpack.c.bf16 %v155_v28, %v151_v26  ;;  %v157_v30 = vpop.f32.mrb[3].mxu0 }
  0xfd   :  { %v2357_v31 = vpack.c.bf16 %v157_v30, %v153_v27 }
  0xfe   :  { %265 = vxpose.xlu0.c.b16.start.end [1/1] (short) %v264_v29, 128  ;;  %1847 = vmatprep.subr.bf16.mxu1 %v264_v29 }
  0xff   :  { %1848 = vmatpush3.bf16.msra.mxu1 %v264_v29 }
 0x100   :  { %2001 = vmatprep.subr.bf16.mxu1 %v2292_v56 }
 0x164   :  { %v273_v32 = vpop.trf.xlu0 }
 0x165   :  { %1849 = vmatprep.mubr.msk.bf16.mxu1 %vm281_vm1, %v273_v32 }
 0x168   :  { %v274_v33 = vpop.trf.xlu0 }
 0x169   :  { %1850 = vmatmul.mubr.msk.bf16.vlgmr.msra.gmra.mrb[0].mxu1 %vm281_vm1, %v274_v33 }
 0x16c   :  { %v275_v34 = vpop.trf.xlu0 }
 0x16d   :  { %1853 = vmatprep.mubr.msk.bf16.mxu1 %vm281_vm1, %v275_v34 }
 0x170   :  { %v276_v35 = vpop.trf.xlu0 }
 0x171   :  { %1854 = vmatmul.mubr.msk.bf16.gmra.mrb[4].mxu1 %vm281_vm1, %v276_v35 }
 0x174   :  { %v277_v36 = vpop.trf.xlu0 }
 0x175   :  { %1857 = vmatprep.mubr.msk.bf16.mxu1 %vm281_vm1, %v277_v36 }
 0x178   :  { %v278_v37 = vpop.trf.xlu0 }
 0x179   :  { %1858 = vmatmul.mubr.msk.bf16.gmra.mrb[8].mxu1 %vm281_vm1, %v278_v37 }
 0x17c   :  { %v279_v38 = vpop.trf.xlu0 }
 0x17d   :  { %1861 = vmatprep.mubr.msk.bf16.mxu1 %vm281_vm1, %v279_v38 }
 0x180   :  { %v280_v39 = vpop.trf.xlu0 }
 0x181   :  { %1862 = vmatmul.mubr.msk.bf16.gmra.mrb[12].mxu1 %vm281_vm1, %v280_v39 }
 0x23c   :  { %v1851_v40 = vpop.f32.mrb[0].mxu1 }
 0x23d   :  { %407 = vmax.xlane.f32.xlu1 %v1851_v40  ;;  %v340_v41 = vpop.f32.mrb[1].mxu1 }
 0x23e   :  { %403 = vmax.xlane.f32.xlu0 %v340_v41  ;;  %v1852_v42 = vpop.f32.mrb[2].mxu1 }
 0x23f   :  { %v343_v43 = vpop.f32.mrb[3].mxu1 }
 0x241   :  { %409 = vmax.xlane.f32.xlu1 %v1852_v42 }
 0x244   :  { %v1855_v44 = vpop.f32.mrb[4].mxu1 }
 0x245   :  { %405 = vmax.xlane.f32.xlu1 %v343_v43  ;;  %v356_v45 = vpop.f32.mrb[5].mxu1 }
 0x246   :  { %v1856_v46 = vpop.f32.mrb[6].mxu1 }
 0x247   :  { %v2367_v47 = vpop.f32.mrb[7].mxu1 }
 0x249   :  { %415 = vmax.xlane.f32.xlu1 %v1855_v44 }
 0x24c   :  { %v2369_v48 = vpop.f32.mrb[8].mxu1 }
 0x24d   :  { %411 = vmax.xlane.f32.xlu1 %v356_v45  ;;  %v2371_v49 = vpop.f32.mrb[9].mxu1 }
 0x24e   :  { %v2373_v50 = vpop.f32.mrb[10].mxu1 }
 0x24f   :  { %v2375_v51 = vpop.f32.mrb[11].mxu1 }
 0x251   :  { %417 = vmax.xlane.f32.xlu1 %v1856_v46 }
 0x254   :  { %v2377_v52 = vpop.f32.mrb[12].mxu1 }
 0x255   :  { %413 = vmax.xlane.f32.xlu1 %v2367_v47  ;;  %v2380_v53 = vpop.f32.mrb[13].mxu1 }
 0x256   :  { %v2382_v54 = vpop.f32.mrb[14].mxu1 }
 0x257   :  { %v2384_v55 = vpop.f32.mrb[15].mxu1 }
 0x258   :  { %429 = vmax.xlane.f32.xlu0 %v2384_v55 }
 0x259   :  { %423 = vmax.xlane.f32.xlu1 %v2369_v48 }
 0x25c   :  { %433 = vmax.xlane.f32.xlu0 %v2382_v54 }
 0x25d   :  { %419 = vmax.xlane.f32.xlu1 %v2371_v49 }
 0x261   :  { %421 = vmax.xlane.f32.xlu1 %v2375_v51 }
 0x265   :  { %425 = vmax.xlane.f32.xlu1 %v2373_v50 }
 0x269   :  { %427 = vmax.xlane.f32.xlu1 %v2380_v53 }
 0x26d   :  { %431 = vmax.xlane.f32.xlu1 %v2377_v52 }
 0x2ca   :  { %v408_v57 = vpop.xlane.xlu1 %407 }
 0x2cb   :  { %v404_v58 = vpop.xlane.xlu0 %403  ;;  %v437_v59 = vsub.f32 %v1851_v40, %v408_v57 }
 0x2cc   :  { %v435_v60 = vsub.f32 %v340_v41, %v404_v58 }
 0x2cd   :  { %v455_v1 = vmul.f32 1.442695, %v437_v59 }
 0x2ce   :  { %v451_v61 = vmul.f32 1.442695, %v435_v60  ;;  %v410_v62 = vpop.xlane.xlu1 %409 }
 0x2cf   :  { %v438_v63 = vsub.f32 %v1852_v42, %v410_v62 }
 0x2d0   :  { %2076 = vpow2.f32 %v451_v61 }
 0x2d1   :  { %v457_v2 = vmul.f32 1.442695, %v438_v63 }
 0x2d2   :  { %v406_v3 = vpop.xlane.xlu1 %405 }
 0x2d3   :  { %2078 = vpow2.f32 %v457_v2  ;;  %v436_v4 = vsub.f32 %v343_v43, %v406_v3 }
 0x2d4   :  { %2080 = vpow2.f32 %v455_v1 }
 0x2d5   :  { %v453_v5 = vmul.f32 1.442695, %v436_v4 }
 0x2d6   :  { %v416_v6 = vpop.xlane.xlu1 %415 }
 0x2d7   :  { %2082 = vpow2.f32 %v453_v5  ;;  %v441_v8 = vsub.f32 %v1855_v44, %v416_v6  ;;  %v2294_v5 = vmov 0.0  }
 0x2d8   :  { %1897 = vmatprep.mubr.msk.f32.mxu1 %vm2293_vm2, %v2294_v5 }
 0x2d9   :  { %v463_v14 = vmul.f32 1.442695, %v441_v8 }
 0x2da   :  { %v2395_v7 = vpop.eup %2076  ;;  %v412_v9 = vpop.xlane.xlu1 %411 }
 0x2db   :  { %v439_v10 = vsub.f32 %v356_v45, %v412_v9  ;;  %483 = vadd.xlane.f32.xlu1 %v2395_v7 }
 0x2dd   :  { %v2398_v11 = vpop.eup %2078  ;;  %v459_v12 = vmul.f32 1.442695, %v439_v10 }
 0x2de   :  { %v2400_v13 = vpop.eup %2080  ;;  %v418_v15 = vpop.xlane.xlu1 %417  ;;  %489 = vadd.xlane.f32.xlu0 %v2398_v11 }
 0x2df   :  { %2084 = vpow2.f32 %v459_v12  ;;  %v442_v16 = vsub.f32 %v1856_v46, %v418_v15  ;;  %487 = vadd.xlane.f32.xlu1 %v2400_v13  ;;  %v2005_v24 = vpack.c.bf16 %v2398_v11, %v2400_v13 }
 0x2e0   :  { %2086 = vpow2.f32 %v463_v14 }
 0x2e1   :  { %v2404_v17 = vpop.eup %2082  ;;  %v465_v18 = vmul.f32 1.442695, %v442_v16 }
 0x2e2   :  { %v414_v19 = vpop.xlane.xlu1 %413  ;;  %485 = vadd.xlane.f32.xlu0 %v2404_v17  ;;  %v2002_v20 = vpack.c.bf16 %v2404_v17, %v2395_v7 }
 0x2e3   :  { %2088 = vpow2.f32 %v465_v18  ;;  %v440_v21 = vsub.f32 %v2367_v47, %v414_v19 }
 0x2e4   :  { %2003 = vmatpush3.bf16.msra.mxu1 %v2002_v20 }
 0x2e5   :  { %v461_v22 = vmul.f32 1.442695, %v440_v21  ;;  %2004 = vmatprep.subr.bf16.mxu1 %v2292_v56  ;;  %v430_v32 = vpop.xlane.xlu0 %429 }
 0x2e6   :  { %v424_v23 = vpop.xlane.xlu1 %423  ;;  %v448_v39 = vsub.f32 %v2384_v55, %v430_v32 }
 0x2e7   :  { %2090 = vpow2.f32 %v461_v22  ;;  %v445_v26 = vsub.f32 %v2369_v48, %v424_v23 }
 0x2e8   :  { %2006 = vmatpush3.bf16.msra.mxu1 %v2005_v24  ;;  %v477_v45 = vmul.f32 1.442695, %v448_v39 }
 0x2e9   :  { %v2413_v25 = vpop.eup %2084  ;;  %2007 = vmatprep.subr.bf16.mxu1 %v2292_v56  ;;  %v471_v34 = vmul.f32 1.442695, %v445_v26  ;;  %v434_v42 = vpop.xlane.xlu0 %433 }
 0x2ea   :  { %v420_v27 = vpop.xlane.xlu1 %419  ;;  %491 = vadd.xlane.f32.xlu1 %v2413_v25  ;;  %v2419_v29 = vpop.eup %2086  ;;  %v450_v46 = vsub.f32 %v2382_v54, %v434_v42 }
 0x2eb   :  { %v443_v28 = vsub.f32 %v2371_v49, %v420_v27 }
 0x2ed   :  { %v2421_v30 = vpop.eup %2088  ;;  %v467_v33 = vmul.f32 1.442695, %v443_v28 }
 0x2ee   :  { %v422_v35 = vpop.xlane.xlu1 %421  ;;  %495 = vadd.xlane.f32.xlu1 %v2419_v29  ;;  %497 = vadd.xlane.f32.xlu0 %v2421_v30  ;;  %v2011_v48 = vpack.c.bf16 %v2421_v30, %v2419_v29 }
 0x2ef   :  { %2092 = vpow2.f32 %v467_v33  ;;  %v444_v36 = vsub.f32 %v2375_v51, %v422_v35 }
 0x2f0   :  { %2094 = vpow2.f32 %v471_v34 }
 0x2f1   :  { %v2426_v37 = vpop.eup %2090  ;;  %v469_v38 = vmul.f32 1.442695, %v444_v36 }
 0x2f2   :  { %v426_v40 = vpop.xlane.xlu1 %425  ;;  %493 = vadd.xlane.f32.xlu0 %v2426_v37  ;;  %v2008_v41 = vpack.c.bf16 %v2426_v37, %v2413_v25 }
 0x2f3   :  { %2096 = vpow2.f32 %v469_v38  ;;  %v446_v43 = vsub.f32 %v2373_v50, %v426_v40  ;;  %v481_v50 = vmul.f32 1.442695, %v450_v46 }
 0x2f4   :  { %2009 = vmatpush3.bf16.msra.mxu1 %v2008_v41 }
 0x2f5   :  { %v473_v44 = vmul.f32 1.442695, %v446_v43  ;;  %2010 = vmatprep.subr.bf16.mxu1 %v2292_v56 }
 0x2f6   :  { %v428_v47 = vpop.xlane.xlu1 %427 }
 0x2f7   :  { %2098 = vpow2.f32 %v473_v44  ;;  %v447_v49 = vsub.f32 %v2380_v53, %v428_v47 }
 0x2f8   :  { %2012 = vmatpush3.bf16.msra.mxu1 %v2011_v48  ;;  %2100 = vpow2.f32 %v477_v45 }
 0x2f9   :  { %v2438_v51 = vpop.eup %2092  ;;  %v475_v55 = vmul.f32 1.442695, %v447_v49  ;;  %2013 = vmatprep.subr.bf16.mxu1 %v2292_v56 }
 0x2fa   :  { %499 = vadd.xlane.f32.xlu1 %v2438_v51  ;;  %v432_v57 = vpop.xlane.xlu1 %431  ;;  %v2443_v58 = vpop.eup %2094 }
 0x2fb   :  { %2102 = vpow2.f32 %v475_v55  ;;  %v449_v54 = vsub.f32 %v2377_v52, %v432_v57 }
 0x2fc   :  { %2104 = vpow2.f32 %v481_v50 }
 0x2fd   :  { %v2445_v59 = vpop.eup %2096  ;;  %v479_v60 = vmul.f32 1.442695, %v449_v54 }
 0x2fe   :  { %503 = vadd.xlane.f32.xlu1 %v2443_v58  ;;  %v2014_v53 = vpack.c.bf16 %v2445_v59, %v2438_v51 }
 0x2ff   :  { %2106 = vpow2.f32 %v479_v60 }
 0x300   :  { %2015 = vmatpush3.bf16.msra.mxu1 %v2014_v53 }
 0x301   :  { %v2450_v61 = vpop.eup %2098  ;;  %2016 = vmatprep.subr.bf16.mxu1 %v2292_v56 }
 0x302   :  { %505 = vadd.xlane.f32.xlu0 %v2450_v61  ;;  %v2017_v52 = vpack.c.bf16 %v2450_v61, %v2443_v58  ;;  %v2456_v62 = vpop.eup %2100 }
 0x304   :  { %2018 = vmatpush3.bf16.msra.mxu1 %v2017_v52 }
 0x305   :  { %v2458_v63 = vpop.eup %2102  ;;  %2019 = vmatprep.subr.bf16.mxu1 %v2292_v56 }
 0x306   :  { %507 = vadd.xlane.f32.xlu1 %v2458_v63  ;;  %501 = vadd.xlane.f32.xlu0 %v2445_v59  ;;  %v2020_v1 = vpack.c.bf16 %v2456_v62, %v2458_v63  ;;  %v2465_v2 = vpop.eup %2104 }
 0x308   :  { %2021 = vmatpush3.bf16.msra.mxu1 %v2020_v1 }
 0x309   :  { %v2467_v3 = vpop.eup %2106  ;;  %2022 = vmatprep.subr.bf16.mxu1 %v2292_v56 }
 0x30a   :  { %511 = vadd.xlane.f32.xlu1 %v2467_v3  ;;  %513 = vadd.xlane.f32.xlu0 %v2465_v2  ;;  %v2023_v4 = vpack.c.bf16 %v2465_v2, %v2467_v3 }
 0x30c   :  { %2024 = vmatpush3.bf16.msra.mxu1 %v2023_v4  ;;  %v650_v4 = vlaneseq }
 0x30d   :  { %1924 = vmatprep.subr.bf16.mxu1 %v2357_v31 }
 0x30e   :  { %509 = vadd.xlane.f32.xlu0 %v2456_v62 }
 0x337   :  { %748 = vxpose.xlu1.c.b16.start.end [1/1] (short) %v2357_v31, 128 }
 0x368   :  { %v484_v6 = vpop.xlane.xlu1 %483 }
 0x369   :  { %2108 = vrcp.f32 %v484_v6 }
 0x36b   :  { %v490_v8 = vpop.xlane.xlu0 %489 }
 0x36c   :  { %v488_v10 = vpop.xlane.xlu1 %487 }
 0x36f   :  { %v486_v9 = vpop.xlane.xlu0 %485 }
 0x370   :  { %2110 = vrcp.f32 %v486_v9  ;;  %v2533_v9 = vshrl.u32 %v650_v4, 7 }
 0x371   :  { %2112 = vrcp.f32 %v488_v10 }
 0x372   :  { %2114 = vrcp.f32 %v490_v8 }
 0x373   :  { %v2479_v12 = vpop.eup %2108 }
 0x374   :  { %531 = vxpose.xlu0.b32.start [1/16] (narrow) %v2479_v12, 8 }
 0x377   :  { %v492_v14 = vpop.xlane.xlu1 %491 }
 0x378   :  { %2116 = vrcp.f32 %v492_v14 }
 0x37a   :  { %v2482_v15 = vpop.eup %2110 }
 0x37b   :  { %532 = vxpose.xlu0.b32.cont [2/16] (narrow) %v2482_v15, 8  ;;  %v498_v16 = vpop.xlane.xlu0 %497  ;;  %v2485_v18 = vpop.eup %2112 }
 0x37c   :  { %v496_v20 = vpop.xlane.xlu1 %495  ;;  %v2488_v21 = vpop.eup %2114 }
 0x37f   :  { %533 = vxpose.xlu0.b32.cont [3/16] (narrow) %v2485_v18, 8  ;;  %v494_v19 = vpop.xlane.xlu0 %493 }
 0x380   :  { %2118 = vrcp.f32 %v494_v19  ;;  %v637_v19 = vmul.f32 %v2488_v21, %v2398_v11 }
 0x381   :  { %2120 = vrcp.f32 %v496_v20 }
 0x382   :  { %v2491_v22 = vpop.eup %2116  ;;  %2122 = vrcp.f32 %v498_v16  ;;  %v634_v16 = vmul.f32 %v2479_v12, %v2395_v7 }
 0x383   :  { %534 = vxpose.xlu0.b32.cont [4/16] (narrow) %v2488_v21, 8 }
 0x387   :  { %535 = vxpose.xlu0.b32.cont [5/16] (narrow) %v2491_v22, 8  ;;  %v500_v23 = vpop.xlane.xlu1 %499 }
 0x388   :  { %2124 = vrcp.f32 %v500_v23  ;;  %v635_v23 = vmul.f32 %v2482_v15, %v2404_v17 }
 0x38a   :  { %v2494_v24 = vpop.eup %2118 }
 0x38b   :  { %536 = vxpose.xlu0.b32.cont [6/16] (narrow) %v2494_v24, 8  ;;  %v2497_v26 = vpop.eup %2120  ;;  %v504_v34 = vpop.xlane.xlu1 %503  ;;  %v639_v11 = vmul.f32 %v2494_v24, %v2426_v37 }
 0x38c   :  { %v2500_v28 = vpop.eup %2122 }
 0x38d   :  { %v641_v17 = vmul.f32 %v2500_v28, %v2421_v30 }
 0x38f   :  { %537 = vxpose.xlu0.b32.cont [7/16] (narrow) %v2497_v26, 8  ;;  %v506_v27 = vpop.xlane.xlu0 %505 }
 0x392   :  { %v2503_v33 = vpop.eup %2124 }
 0x393   :  { %538 = vxpose.xlu0.b32.cont [8/16] (narrow) %v2500_v28, 8  ;;  %v502_v32 = vpop.xlane.xlu0 %501  ;;  %v508_v36 = vpop.xlane.xlu1 %507 }
 0x394   :  { %2126 = vrcp.f32 %v502_v32  ;;  %v638_v32 = vmul.f32 %v2491_v22, %v2413_v25 }
 0x395   :  { %2128 = vrcp.f32 %v504_v34  ;;  %v640_v34 = vmul.f32 %v2497_v26, %v2419_v29 }
 0x396   :  { %2130 = vrcp.f32 %v506_v27  ;;  %v636_v27 = vmul.f32 %v2485_v18, %v2400_v13  ;;  %v642_v13 = vmul.f32 %v2503_v33, %v2438_v51 }
 0x397   :  { %539 = vxpose.xlu0.b32.cont [9/16] (narrow) %v2503_v33, 8  ;;  %v514_v35 = vpop.xlane.xlu0 %513  ;;  %2132 = vrcp.f32 %v508_v36  ;;  %v512_v41 = vpop.xlane.xlu1 %511 }
 0x39b   :  { %v510_v39 = vpop.xlane.xlu0 %509 }
 0x39c   :  { %2134 = vrcp.f32 %v510_v39 }
 0x39d   :  { %2136 = vrcp.f32 %v512_v41  ;;  %v756_v47 = vpop.trf.xlu1 }
 0x39e   :  { %v2506_v38 = vpop.eup %2126  ;;  %2138 = vrcp.f32 %v514_v35 }
 0x39f   :  { %540 = vxpose.xlu0.b32.cont [10/16] (narrow) %v2506_v38, 8  ;;  %v2509_v40 = vpop.eup %2128  ;;  %v643_v30 = vmul.f32 %v2506_v38, %v2445_v59 }
 0x3a0   :  { %v2512_v42 = vpop.eup %2130  ;;  %v644_v12 = vmul.f32 %v2509_v40, %v2443_v58 }
 0x3a1   :  { %v2133_v43 = vpop.eup %2132  ;;  %v757_v48 = vpop.trf.xlu1  ;;  %v645_v15 = vmul.f32 %v2512_v42, %v2450_v61 }
 0x3a2   :  { %v646_v18 = vmul.f32 %v2133_v43, %v2458_v63 }
 0x3a3   :  { %541 = vxpose.xlu0.b32.cont [11/16] (narrow) %v2509_v40, 8 }
 0x3a5   :  { %v758_v55 = vpop.trf.xlu1 }
 0x3a6   :  { %v2135_v44 = vpop.eup %2134 }
 0x3a7   :  { %542 = vxpose.xlu0.b32.cont [12/16] (narrow) %v2512_v42, 8  ;;  %v2137_v45 = vpop.eup %2136  ;;  %v647_v51 = vmul.f32 %v2135_v44, %v2456_v62 }
 0x3a8   :  { %v2139_v46 = vpop.eup %2138  ;;  %v648_v21 = vmul.f32 %v2137_v45, %v2467_v3 }
 0x3a9   :  { %v759_v50 = vpop.trf.xlu1  ;;  %v649_v22 = vmul.f32 %v2139_v46, %v2465_v2 }
 0x3ab   :  { %543 = vxpose.xlu0.b32.cont [13/16] (narrow) %v2133_v43, 8 }
 0x3ad   :  { %v760_v57 = vpop.trf.xlu1 }
 0x3af   :  { %544 = vxpose.xlu0.b32.cont [14/16] (narrow) %v2135_v44, 8 }
 0x3b1   :  { %v761_v54 = vpop.trf.xlu1 }
 0x3b3   :  { %545 = vxpose.xlu0.b32.cont [15/16] (narrow) %v2137_v45, 8 }
 0x3b5   :  { %v762_v60 = vpop.trf.xlu1 }
 0x3b7   :  { %546 = vxpose.xlu0.b32.end [16/16] (narrow) %v2139_v46, 8 }
 0x3e0   :  { %2065 = vset.pattern.permute.xlu0 %v2291_v0 }
 0x3fb   :  { %v547_v49 = vpop.trf.xlu0 }
 0x3fc   :  { %1898 = vmatmul.mubr.f32.vlgmr.msra.gmra.mrb[16].mxu1 %v547_v49 }
 0x3fd   :  { %1925 = vmatpush3.bf16.msra.mxu1 %v2357_v31  ;;  %1926 = vmatprep.mubr.msk.bf16.mxu1 %vm281_vm1, %v756_v47  ;;  %v763_v31 = vpop.trf.xlu1 }
 0x3fe   :  { %2025 = vmatprep.subr.bf16.mxu1 %v2292_v56 }
 0x400   :  { %1927 = vmatmul.mubr.msk.bf16.vlgmr.msra.gmra.mrb[20].mxu1 %vm281_vm1, %v757_v48 }
 0x401   :  { %1930 = vmatprep.mubr.msk.bf16.mxu1 %vm281_vm1, %v758_v55 }
 0x408   :  { %1931 = vmatmul.mubr.msk.bf16.gmra.mrb[24].mxu1 %vm281_vm1, %v759_v50 }
 0x409   :  { %1934 = vmatprep.mubr.msk.bf16.mxu1 %vm281_vm1, %v760_v57 }
 0x410   :  { %1935 = vmatmul.mubr.msk.bf16.gmra.mrb[28].mxu1 %vm281_vm1, %v761_v54 }
 0x411   :  { %1938 = vmatprep.mubr.msk.bf16.mxu1 %vm281_vm1, %v762_v60 }
 0x418   :  { %1939 = vmatmul.mubr.msk.bf16.gmra.mrb[32].mxu1 %vm281_vm1, %v763_v31 }
 0x419   :  { %1974 = vmatprep.mubr.msk.f32.mxu1 %vm2293_vm2, %v2294_v5  ;;  %v652_v5 = vsub.s32 0, %v2533_v9 }
 0x4cf   :  { %v629_v53 = vpop.f32.mrb[16].mxu1 }
 0x4d0   :  { %v630_v52 = vadd.f32 1e-09, %v629_v53  ;;  %v1899_v1 = vpop.f32.mrb[17].mxu1 }
 0x4d2   :  { %2140 = vrcp.f32 %v630_v52 }
 0x4d3   :  { %v2528_v6 = vpop.f32.mrb[20].mxu1 }
 0x4d4   :  { %889 = vmax.xlane.f32.xlu1 %v2528_v6  ;;  %v2531_v8 = vpop.f32.mrb[21].mxu1 }
 0x4d5   :  { %v2535_v10 = vpop.f32.mrb[22].mxu1 }
 0x4d6   :  { %v2537_v14 = vpop.f32.mrb[23].mxu1 }
 0x4d8   :  { %885 = vmax.xlane.f32.xlu1 %v2531_v8 }
 0x4db   :  { %v2545_v20 = vpop.f32.mrb[24].mxu1 }
 0x4dc   :  { %v2141_v35 = vpop.eup %2140  ;;  %891 = vmax.xlane.f32.xlu1 %v2535_v10  ;;  %897 = vmax.xlane.f32.xlu0 %v2545_v20  ;;  %v2557_v7 = vpop.f32.mrb[25].mxu1 }
 0x4dd   :  { %v653_v25 = vrot.slane %v2141_v35, %v652_v5  ;;  %v2567_v29 = vpop.f32.mrb[26].mxu1 }
 0x4de   :  { %v2574_v37 = vpop.f32.mrb[27].mxu1 }
 0x4df   :  { %v654_v24 = vmul.f32 %v653_v25, %v634_v16  ;;  %v655_v26 = vmul.f32 %v653_v25, %v635_v23  ;;  %v656_v28 = vmul.f32 %v653_v25, %v636_v27  ;;  %v657_v58 = vmul.f32 %v653_v25, %v637_v19 }
 0x4e0   :  { %887 = vmax.xlane.f32.xlu1 %v2537_v14  ;;  %v658_v61 = vmul.f32 %v653_v25, %v638_v32  ;;  %v659_v33 = vmul.f32 %v653_v25, %v639_v11  ;;  %v660_v63 = vmul.f32 %v653_v25, %v640_v34  ;;  %v661_v36 = vmul.f32 %v653_v25, %v641_v17 }
 0x4e1   :  { %v670_v39 = vpack.c.bf16 %v655_v26, %v654_v24  ;;  %v671_v40 = vpack.c.bf16 %v657_v58, %v656_v28  ;;  %v662_v41 = vmul.f32 %v653_v25, %v642_v13  ;;  %v663_v59 = vmul.f32 %v653_v25, %v643_v30 }
 0x4e2   :  { %v672_v38 = vpack.c.bf16 %v659_v33, %v658_v61  ;;  %v673_v62 = vpack.c.bf16 %v661_v36, %v660_v63  ;;  %v664_v42 = vmul.f32 %v653_v25, %v644_v12  ;;  %v665_v3 = vmul.f32 %v653_v25, %v645_v15 }
 0x4e3   :  { %1900 = vmatprep.subr.bf16.mxu0 %v670_v39  ;;  %v2582_v2 = vpop.f32.mrb[28].mxu1  ;;  %v674_v43 = vpack.c.bf16 %v663_v59, %v662_v41  ;;  %v666_v44 = vmul.f32 %v653_v25, %v646_v18  ;;  %v667_v45 = vmul.f32 %v653_v25, %v647_v51  ;;  %v668_v46 = vmul.f32 %v653_v25, %v648_v21 }
 0x4e4   :  { %1901 = vmatpush3.bf16.msra.mxu0 %v670_v39  ;;  %893 = vmax.xlane.f32.xlu1 %v2557_v7  ;;  %v2585_v47 = vpop.f32.mrb[29].mxu1  ;;  %v675_v48 = vpack.c.bf16 %v665_v3, %v664_v42  ;;  %v669_v49 = vmul.f32 %v653_v25, %v649_v22 }
 0x4e5   :  { %1902 = vmatprep.subr.bf16.mxu0 %v671_v40  ;;  %v2587_v55 = vpop.f32.mrb[30].mxu1  ;;  %v676_v50 = vpack.c.bf16 %v667_v45, %v666_v44 }
 0x4e6   :  { %v2589_v57 = vpop.f32.mrb[31].mxu1  ;;  %v677_v54 = vpack.c.bf16 %v669_v49, %v668_v46 }
 0x4e8   :  { %1903 = vmatpush3.bf16.msra.mxu0 %v671_v40  ;;  %899 = vmax.xlane.f32.xlu1 %v2567_v29 }
 0x4e9   :  { %1904 = vmatprep.subr.bf16.mxu0 %v672_v38 }
 0x4eb   :  { %v2592_v60 = vpop.f32.mrb[32].mxu1 }
 0x4ec   :  { %1905 = vmatpush3.bf16.msra.mxu0 %v672_v38  ;;  %895 = vmax.xlane.f32.xlu1 %v2574_v37  ;;  %v2595_v31 = vpop.f32.mrb[33].mxu1 }
 0x4ed   :  { %1906 = vmatprep.subr.bf16.mxu0 %v673_v62  ;;  %v2597_v53 = vpop.f32.mrb[34].mxu1 }
 0x4ee   :  { %v2599_v52 = vpop.f32.mrb[35].mxu1 }
 0x4f0   :  { %1907 = vmatpush3.bf16.msra.mxu0 %v673_v62  ;;  %905 = vmax.xlane.f32.xlu1 %v2582_v2 }
 0x4f1   :  { %1908 = vmatprep.subr.bf16.mxu0 %v674_v43 }
 0x4f4   :  { %1909 = vmatpush3.bf16.msra.mxu0 %v674_v43  ;;  %901 = vmax.xlane.f32.xlu1 %v2585_v47 }
 0x4f5   :  { %1910 = vmatprep.subr.bf16.mxu0 %v675_v48 }
 0x4f8   :  { %1911 = vmatpush3.bf16.msra.mxu0 %v675_v48  ;;  %907 = vmax.xlane.f32.xlu1 %v2587_v55 }
 0x4f9   :  { %1912 = vmatprep.subr.bf16.mxu0 %v676_v50 }
 0x4fc   :  { %1913 = vmatpush3.bf16.msra.mxu0 %v676_v50  ;;  %903 = vmax.xlane.f32.xlu1 %v2589_v57 }
 0x4fd   :  { %1914 = vmatprep.subr.bf16.mxu0 %v677_v54 }
 0x500   :  { %1915 = vmatpush3.bf16.msra.mxu0 %v677_v54  ;;  %913 = vmax.xlane.f32.xlu1 %v2592_v60 }
 0x504   :  { %909 = vmax.xlane.f32.xlu1 %v2595_v31 }
 0x508   :  { %911 = vmax.xlane.f32.xlu1 %v2599_v52 }
 0x50c   :  { %915 = vmax.xlane.f32.xlu1 %v2597_v53 }
 0x561   :  { %v890_v1 = vpop.xlane.xlu1 %889 }
 0x562   :  { %v919_v4 = vsub.f32 %v2528_v6, %v890_v1 }
 0x564   :  { %v937_v16 = vmul.f32 1.442695, %v919_v4 }
 0x565   :  { %v886_v19 = vpop.xlane.xlu1 %885 }
 0x566   :  { %2142 = vpow2.f32 %v937_v16  ;;  %v917_v23 = vsub.f32 %v2531_v8, %v886_v19 }
 0x568   :  { %v933_v27 = vmul.f32 1.442695, %v917_v23 }
 0x569   :  { %v892_v32 = vpop.xlane.xlu1 %891  ;;  %v898_v35 = vpop.xlane.xlu0 %897 }
 0x56a   :  { %2144 = vpow2.f32 %v933_v27  ;;  %v920_v34 = vsub.f32 %v2535_v10, %v892_v32  ;;  %v923_v13 = vsub.f32 %v2545_v20, %v898_v35 }
 0x56c   :  { %v939_v11 = vmul.f32 1.442695, %v920_v34  ;;  %v945_v8 = vmul.f32 1.442695, %v923_v13 }
 0x56d   :  { %v888_v17 = vpop.xlane.xlu1 %887 }
 0x56e   :  { %2146 = vpow2.f32 %v939_v11  ;;  %v918_v25 = vsub.f32 %v2537_v14, %v888_v17 }
 0x570   :  { %v2614_v12 = vpop.eup %2142  ;;  %v935_v6 = vmul.f32 1.442695, %v918_v25  ;;  %v2068_v25 = vld [vmem:[%s3213_s1 + $0x8] sm:$0xff]  }
 0x571   :  { %v894_v15 = vpop.xlane.xlu1 %893  ;;  %969 = vadd.xlane.f32.xlu1 %v2614_v12  ;;  %1743 = vmatmul.mubr.msk.bf16.gmra.mrb[4].mxu0 %vm101_vm0, %v2068_v25  ;;  %v1265_v25 = vld [vmem:[%s3216_s4 + $0x20] sm:$0xff] }
 0x572   :  { %2148 = vpow2.f32 %v935_v6  ;;  %v921_v18 = vsub.f32 %v2557_v7, %v894_v15  ;;  %169 = vmatprep.mubr.bf16.mxu0 %v2291_v0  ;;  %v2069_v6 = vld [vmem:[%s3213_s1 + $0x10] sm:$0xff]   ;;  %v2071_v15 = vld [vmem:[%s3213_s1 + $0x20] sm:$0xff]  }
 0x573   :  { %2150 = vpow2.f32 %v945_v8 }
 0x574   :  { %v2618_v30 = vpop.eup %2144  ;;  %v941_v51 = vmul.f32 1.442695, %v921_v18 }
 0x575   :  { %v900_v10 = vpop.xlane.xlu1 %899  ;;  %965 = vadd.xlane.f32.xlu1 %v2618_v30 }
 0x576   :  { %v924_v14 = vsub.f32 %v2567_v29, %v900_v10  ;;  %2152 = vpow2.f32 %v941_v51 }
 0x578   :  { %v2621_v20 = vpop.eup %2146  ;;  %v947_v7 = vmul.f32 1.442695, %v924_v14 }
 0x579   :  { %971 = vadd.xlane.f32.xlu0 %v2621_v20  ;;  %v896_v21 = vpop.xlane.xlu1 %895  ;;  %v2029_v63 = vpack.c.bf16 %v2621_v20, %v2614_v12  ;;  %1744 = vmatmul.mubr.msk.bf16.gmra.mrb[8].mxu0 %vm101_vm0, %v2069_v6 }
 0x57a   :  { %v922_v22 = vsub.f32 %v2574_v37, %v896_v21  ;;  %179 = vmatprep.mubr.bf16.mxu0 %v2291_v0 }
 0x57c   :  { %v2626_v24 = vpop.eup %2148  ;;  %v943_v26 = vmul.f32 1.442695, %v922_v22  ;;  %v200_v22 = vld [vmem:[%s3214_s2] sm:$0xff] }
 0x57d   :  { %v906_v28 = vpop.xlane.xlu1 %905  ;;  %967 = vadd.xlane.f32.xlu1 %v2626_v24  ;;  %v2026_v58 = vpack.c.bf16 %v2626_v24, %v2618_v30  ;;  %v2632_v29 = vpop.eup %2150 }
 0x57e   :  { %2154 = vpow2.f32 %v943_v26  ;;  %v927_v61 = vsub.f32 %v2582_v2, %v906_v28  ;;  %v201_v28 = vld [vmem:[%s3214_s2 + $0x8] sm:$0xff] }
 0x57f   :  { %2027 = vmatpush3.bf16.msra.mxu1 %v2026_v58  ;;  %2156 = vpow2.f32 %v947_v7 }
 0x580   :  { %v953_v33 = vmul.f32 1.442695, %v927_v61  ;;  %2028 = vmatprep.subr.bf16.mxu1 %v2292_v56  ;;  %v2639_v39 = vpop.eup %2152 }
 0x581   :  { %v902_v37 = vpop.xlane.xlu1 %901  ;;  %977 = vadd.xlane.f32.xlu1 %v2632_v29 }
 0x582   :  { %2158 = vpow2.f32 %v953_v33  ;;  %v925_v36 = vsub.f32 %v2585_v47, %v902_v37  ;;  %v202_v33 = vld [vmem:[%s3214_s2 + $0x10] sm:$0xff] }
 0x583   :  { %2030 = vmatpush3.bf16.msra.mxu1 %v2029_v63  ;;  %v203_v63 = vld [vmem:[%s3214_s2 + $0x18] sm:$0xff] }
 0x584   :  { %v949_v40 = vmul.f32 1.442695, %v925_v36  ;;  %2031 = vmatprep.subr.bf16.mxu1 %v2292_v56 }
 0x585   :  { %v908_v41 = vpop.xlane.xlu1 %907  ;;  %973 = vadd.xlane.f32.xlu1 %v2639_v39 }
 0x586   :  { %2160 = vpow2.f32 %v949_v40  ;;  %v928_v38 = vsub.f32 %v2587_v55, %v908_v41 }
 0x588   :  { %v2643_v59 = vpop.eup %2154  ;;  %v955_v44 = vmul.f32 1.442695, %v928_v38  ;;  %v204_v38 = vld [vmem:[%s3214_s2 + $0x20] sm:$0xff] }
 0x589   :  { %975 = vadd.xlane.f32.xlu0 %v2643_v59  ;;  %v904_v62 = vpop.xlane.xlu1 %903  ;;  %v2032_v42 = vpack.c.bf16 %v2643_v59, %v2639_v39  ;;  %v2649_v3 = vpop.eup %2156 }
 0x58a   :  { %v926_v2 = vsub.f32 %v2589_v57, %v904_v62  ;;  %v2035_v47 = vpack.c.bf16 %v2649_v3, %v2632_v29 }
 0x58b   :  { %2033 = vmatpush3.bf16.msra.mxu1 %v2032_v42 }
 0x58c   :  { %v2652_v43 = vpop.eup %2158  ;;  %v951_v45 = vmul.f32 1.442695, %v926_v2  ;;  %2034 = vmatprep.subr.bf16.mxu1 %v2292_v56  ;;  %v205_v2 = vld [vmem:[%s3214_s2 + $0x28] sm:$0xff] }
 0x58d   :  { %979 = vadd.xlane.f32.xlu0 %v2649_v3  ;;  %v914_v46 = vpop.xlane.xlu1 %913  ;;  %985 = vadd.xlane.f32.xlu1 %v2652_v43 }
 0x58e   :  { %2162 = vpow2.f32 %v951_v45  ;;  %v931_v48 = vsub.f32 %v2592_v60, %v914_v46  ;;  %v206_v46 = vld [vmem:[%s3214_s2 + $0x30] sm:$0xff] }
 0x58f   :  { %2036 = vmatpush3.bf16.msra.mxu1 %v2035_v47  ;;  %2164 = vpow2.f32 %v955_v44 }
 0x590   :  { %v2660_v49 = vpop.eup %2160  ;;  %v961_v55 = vmul.f32 1.442695, %v931_v48  ;;  %2037 = vmatprep.subr.bf16.mxu1 %v2292_v56  ;;  %v207_v48 = vld [vmem:[%s3214_s2 + $0x38] sm:$0xff] }
 0x591   :  { %v910_v50 = vpop.xlane.xlu1 %909  ;;  %981 = vadd.xlane.f32.xlu1 %v2660_v49 }
 0x592   :  { %2166 = vpow2.f32 %v961_v55  ;;  %v929_v57 = vsub.f32 %v2595_v31, %v910_v50 }
 0x594   :  { %v957_v54 = vmul.f32 1.442695, %v929_v57 }
 0x595   :  { %v912_v1 = vpop.xlane.xlu1 %911 }
 0x596   :  { %2168 = vpow2.f32 %v957_v54  ;;  %v930_v4 = vsub.f32 %v2599_v52, %v912_v1  ;;  %v1261_v54 = vld [vmem:[%s3216_s4] sm:$0xff] }
 0x598   :  { %v2666_v16 = vpop.eup %2162  ;;  %v959_v60 = vmul.f32 1.442695, %v930_v4 }
 0x599   :  { %983 = vadd.xlane.f32.xlu0 %v2666_v16  ;;  %v916_v19 = vpop.xlane.xlu1 %915  ;;  %v2038_v23 = vpack.c.bf16 %v2666_v16, %v2660_v49  ;;  %v2671_v27 = vpop.eup %2164 }
 0x59a   :  { %2170 = vpow2.f32 %v959_v60  ;;  %v932_v32 = vsub.f32 %v2597_v53, %v916_v19  ;;  %v2041_v52 = vpack.c.bf16 %v2671_v27, %v2652_v43  ;;  %v1262_v60 = vld [vmem:[%s3216_s4 + $0x8] sm:$0xff] }
 0x59b   :  { %2039 = vmatpush3.bf16.msra.mxu1 %v2038_v23 }
 0x59c   :  { %v2674_v31 = vpop.eup %2166  ;;  %v963_v34 = vmul.f32 1.442695, %v932_v32  ;;  %2040 = vmatprep.subr.bf16.mxu1 %v2292_v56  ;;  %v1263_v32 = vld [vmem:[%s3216_s4 + $0x10] sm:$0xff] }
 0x59d   :  { %987 = vadd.xlane.f32.xlu0 %v2671_v27  ;;  %993 = vadd.xlane.f32.xlu1 %v2674_v31 }
 0x59e   :  { %2172 = vpow2.f32 %v963_v34 }
 0x59f   :  { %2042 = vmatpush3.bf16.msra.mxu1 %v2041_v52  ;;  %v1264_v52 = vld [vmem:[%s3216_s4 + $0x18] sm:$0xff] }
 0x5a0   :  { %v2681_v35 = vpop.eup %2168  ;;  %2043 = vmatprep.subr.bf16.mxu1 %v2292_v56 }
 0x5a1   :  { %989 = vadd.xlane.f32.xlu1 %v2681_v35 }
 0x5a4   :  { %v2685_v53 = vpop.eup %2170 }
 0x5a5   :  { %991 = vadd.xlane.f32.xlu0 %v2685_v53  ;;  %v2044_v11 = vpack.c.bf16 %v2685_v53, %v2681_v35 }
 0x5a7   :  { %2045 = vmatpush3.bf16.msra.mxu1 %v2044_v11 }
 0x5a8   :  { %v2690_v17 = vpop.eup %2172  ;;  %2046 = vmatprep.subr.bf16.mxu1 %v2292_v56  ;;  %v2070_v56 = vld [vmem:[%s3213_s1 + $0x18] sm:$0xff]  }
 0x5a9   :  { %995 = vadd.xlane.f32.xlu0 %v2690_v17  ;;  %v2047_v13 = vpack.c.bf16 %v2690_v17, %v2674_v31  ;;  %1745 = vmatmul.mubr.msk.bf16.gmra.mrb[12].mxu0 %vm101_vm0, %v2070_v56  ;;  %v1266_v56 = vld [vmem:[%s3216_s4 + $0x28] sm:$0xff] }
 0x5aa   :  { %189 = vmatprep.mubr.bf16.mxu0 %v2291_v0 }
 0x5ab   :  { %2048 = vmatpush3.bf16.msra.mxu1 %v2047_v13 }
 0x5b1   :  { %1746 = vmatmul.mubr.msk.bf16.gmra.mrb[16].mxu0 %vm101_vm0, %v2071_v15 }
 0x5bf   :  { %210 = vperm.xlu0 %2065, %v200_v22  }
 0x5c3   :  { %215 = vperm.xlu0 %2065, %v201_v28  }
 0x5c7   :  { %220 = vperm.xlu0 %2065, %v202_v33  }
 0x5cb   :  { %225 = vperm.xlu0 %2065, %v203_v63  }
 0x5cf   :  { %230 = vperm.xlu0 %2065, %v204_v38  }
 0x5d3   :  { %235 = vperm.xlu0 %2065, %v205_v2  }
 0x5d7   :  { %240 = vperm.xlu0 %2065, %v206_v46  }
 0x5db   :  { %245 = vperm.xlu0 %2065, %v207_v48  }
 0x5df   :  { %1271 = vperm.xlu0 %2065, %v1261_v54  }
 0x5e3   :  { %1276 = vperm.xlu0 %2065, %v1262_v60  }
 0x5e7   :  { %1281 = vperm.xlu0 %2065, %v1263_v32  }
 0x5eb   :  { %1286 = vperm.xlu0 %2065, %v1264_v52  }
 0x5ef   :  { %1291 = vperm.xlu0 %2065, %v1265_v25  }
 0x5f3   :  { %1296 = vperm.xlu0 %2065, %v1266_v56  }
 0x5fe   :  { %v970_v8 = vpop.xlane.xlu1 %969 }
 0x602   :  { %v966_v18 = vpop.xlane.xlu1 %965 }
 0x603   :  { %2174 = vrcp.f32 %v966_v18 }
 0x606   :  { %v972_v21 = vpop.xlane.xlu0 %971 }
 0x60a   :  { %v968_v10 = vpop.xlane.xlu1 %967 }
 0x60b   :  { %2176 = vrcp.f32 %v968_v10  ;;  %v1268_v10 = vld [vmem:[%s3216_s4 + $0x38] sm:$0xff] }
 0x60c   :  { %2178 = vrcp.f32 %v970_v8  ;;  %v1267_v8 = vld [vmem:[%s3216_s4 + $0x30] sm:$0xff] }
 0x60d   :  { %v2715_v51 = vpop.eup %2174  ;;  %2180 = vrcp.f32 %v972_v21  ;;  %1301 = vperm.xlu0 %2065, %v1267_v8   ;;  %v1547_v21 = vld [vmem:[%s3217_s5 + $0x20] sm:$0xff] }
 0x60e   :  { %1013 = vxpose.xlu1.b32.start [1/16] (narrow) %v2715_v51, 8  ;;  %v978_v14 = vpop.xlane.xlu1 %977 }
 0x611   :  { %1306 = vperm.xlu0 %2065, %v1268_v10  }
 0x612   :  { %v974_v7 = vpop.xlane.xlu1 %973 }
 0x613   :  { %2182 = vrcp.f32 %v974_v7 }
 0x615   :  { %v2721_v26 = vpop.eup %2176 }
 0x616   :  { %1014 = vxpose.xlu1.b32.cont [2/16] (narrow) %v2721_v26, 8  ;;  %v976_v58 = vpop.xlane.xlu0 %975  ;;  %v2727_v61 = vpop.eup %2178 }
 0x617   :  { %2184 = vrcp.f32 %v976_v58  ;;  %v2733_v37 = vpop.eup %2180 }
 0x618   :  { %2186 = vrcp.f32 %v978_v14  ;;  %v1544_v14 = vld [vmem:[%s3217_s5 + $0x8] sm:$0xff] }
 0x619   :  { %1558 = vperm.xlu0 %2065, %v1544_v14  }
 0x61a   :  { %1015 = vxpose.xlu1.b32.cont [3/16] (narrow) %v2727_v61, 8  ;;  %v986_v36 = vpop.xlane.xlu1 %985  ;;  %v980_v40 = vpop.xlane.xlu0 %979 }
 0x61b   :  { %2188 = vrcp.f32 %v980_v40 }
 0x61d   :  { %v2739_v41 = vpop.eup %2182  ;;  %1573 = vperm.xlu0 %2065, %v1547_v21  }
 0x61e   :  { %1016 = vxpose.xlu1.b32.cont [4/16] (narrow) %v2733_v37, 8  ;;  %v982_v62 = vpop.xlane.xlu1 %981 }
 0x61f   :  { %2190 = vrcp.f32 %v982_v62 }
 0x621   :  { %v2745_v42 = vpop.eup %2184 }
 0x622   :  { %1017 = vxpose.xlu1.b32.cont [5/16] (narrow) %v2739_v41, 8  ;;  %v2751_v45 = vpop.eup %2186 }
 0x625   :  { %v2757_v47 = vpop.eup %2188 }
 0x626   :  { %1018 = vxpose.xlu1.b32.cont [6/16] (narrow) %v2745_v42, 8  ;;  %v984_v44 = vpop.xlane.xlu0 %983 }
 0x627   :  { %2192 = vrcp.f32 %v984_v44 }
 0x628   :  { %2194 = vrcp.f32 %v986_v36 }
 0x629   :  { %v2763_v57 = vpop.eup %2190 }
 0x62a   :  { %1019 = vxpose.xlu1.b32.cont [7/16] (narrow) %v2751_v45, 8  ;;  %v994_v55 = vpop.xlane.xlu1 %993  ;;  %v988_v50 = vpop.xlane.xlu0 %987 }
 0x62b   :  { %2196 = vrcp.f32 %v988_v50 }
 0x62e   :  { %1020 = vxpose.xlu1.b32.cont [8/16] (narrow) %v2757_v47, 8  ;;  %v990_v1 = vpop.xlane.xlu1 %989 }
 0x62f   :  { %2198 = vrcp.f32 %v990_v1 }
 0x631   :  { %v2769_v4 = vpop.eup %2192 }
 0x632   :  { %1021 = vxpose.xlu1.b32.cont [9/16] (narrow) %v2763_v57, 8  ;;  %v992_v19 = vpop.xlane.xlu0 %991  ;;  %v2775_v23 = vpop.eup %2194 }
 0x633   :  { %2200 = vrcp.f32 %v992_v19 }
 0x634   :  { %2202 = vrcp.f32 %v994_v55 }
 0x635   :  { %v2781_v34 = vpop.eup %2196 }
 0x636   :  { %1022 = vxpose.xlu1.b32.cont [10/16] (narrow) %v2769_v4, 8  ;;  %v996_v11 = vpop.xlane.xlu0 %995 }
 0x637   :  { %2204 = vrcp.f32 %v996_v11 }
 0x639   :  { %v2787_v13 = vpop.eup %2198 }
 0x63a   :  { %1023 = vxpose.xlu1.b32.cont [11/16] (narrow) %v2775_v23, 8 }
 0x63d   :  { %v2793_v6 = vpop.eup %2200 }
 0x63e   :  { %1024 = vxpose.xlu1.b32.cont [12/16] (narrow) %v2781_v34, 8  ;;  %v2799_v15 = vpop.eup %2202  ;;  %v211_v7 = vpop.permute.xlu0 %210 }
 0x641   :  { %v2805_v18 = vpop.eup %2204 }
 0x642   :  { %1025 = vxpose.xlu1.b32.cont [13/16] (narrow) %v2787_v13, 8  ;;  %v216_v28 = vpop.permute.xlu0 %215  ;;  %v1131_v9 = vmul.f32 %v2805_v18, %v2690_v17 }
 0x644   :  { %v161_v33 = vpop.f32.mrb[4].mxu0 }
 0x645   :  { %v248_v63 = vadd.f32 %v211_v7, %v161_v33  ;;  %v163_v36 = vpop.f32.mrb[5].mxu0 }
 0x646   :  { %1026 = vxpose.xlu1.b32.cont [14/16] (narrow) %v2793_v6, 8  ;;  %v221_v58 = vpop.permute.xlu0 %220  ;;  %v249_v40 = vadd.f32 %v211_v7, %v163_v36  ;;  %v165_v38 = vpop.f32.mrb[6].mxu0 }
 0x647   :  { %v250_v62 = vadd.f32 %v216_v28, %v165_v38  ;;  %v167_v2 = vpop.f32.mrb[7].mxu0 }
 0x648   :  { %v251_v44 = vadd.f32 %v216_v28, %v167_v2 }
 0x649   :  { %v678_v46 = vpack.c.bf16 %v250_v62, %v248_v63 }
 0x64a   :  { %1027 = vxpose.xlu1.b32.cont [15/16] (narrow) %v2799_v15, 8  ;;  %v226_v48 = vpop.permute.xlu0 %225  ;;  %v1160_v55 = vpack.c.bf16 %v251_v44, %v249_v40 }
 0x64b   :  { %1916 = vmatprep.mubr.bf16.mxu0 %v678_v46 }
 0x64c   :  { %v171_v50 = vpop.f32.mrb[8].mxu0 }
 0x64d   :  { %v252_v54 = vadd.f32 %v221_v58, %v171_v50  ;;  %v173_v1 = vpop.f32.mrb[9].mxu0 }
 0x64e   :  { %1028 = vxpose.xlu1.b32.end [16/16] (narrow) %v2805_v18, 8  ;;  %v2819_v60 = vadd.f32 %v221_v58, %v173_v1  ;;  %v175_v19 = vpop.f32.mrb[10].mxu0  ;;  %v231_v11 = vpop.permute.xlu0 %230 }
 0x64f   :  { %v254_v32 = vadd.f32 %v226_v48, %v175_v19  ;;  %v177_v52 = vpop.f32.mrb[11].mxu0 }
 0x650   :  { %v2821_v25 = vadd.f32 %v226_v48, %v177_v52 }
 0x651   :  { %v679_v56 = vpack.c.bf16 %v254_v32, %v252_v54 }
 0x652   :  { %v1161_v8 = vpack.c.bf16 %v2821_v25, %v2819_v60 }
 0x653   :  { %1917 = vmatmul.mubr.bf16.vlgmr.msra.gmra.mrb[20].mxu0 %v679_v56 }
 0x66c   :  { %2066 = vset.pattern.permute.xlu1 %v2291_v0 }
 0x67c   :  { %v181_v10 = vpop.f32.mrb[12].mxu0 }
 0x67d   :  { %v256_v14 = vadd.f32 %v231_v11, %v181_v10  ;;  %v183_v21 = vpop.f32.mrb[13].mxu0 }
 0x67e   :  { %v2825_v7 = vadd.f32 %v231_v11, %v183_v21  ;;  %v185_v28 = vpop.f32.mrb[14].mxu0  ;;  %v1116_v21 = vmul.f32 %v2715_v51, %v2618_v30  ;;  %v1126_v30 = vmul.f32 %v2775_v23, %v2652_v43  ;;  %v1130_v43 = vmul.f32 %v2799_v15, %v2674_v31 }
 0x67f   :  { %v187_v33 = vpop.f32.mrb[15].mxu0 }
 0x684   :  { %v191_v38 = vpop.f32.mrb[16].mxu0 }
 0x685   :  { %v193_v2 = vpop.f32.mrb[17].mxu0 }
 0x686   :  { %v195_v50 = vpop.f32.mrb[18].mxu0 }
 0x687   :  { %v197_v19 = vpop.f32.mrb[19].mxu0 }
 0x692   :  { %v1029_v22 = vpop.trf.xlu1 }
 0x693   :  { %1975 = vmatmul.mubr.f32.vlgmr.msra.gmra.mrb[18].mxu1 %v1029_v22  ;;  %v236_v22 = vpop.permute.xlu0 %235 }
 0x694   :  { %1383 = vmatprep.mubr.bf16.mxu1 %v2291_v0  ;;  %v258_v58 = vadd.f32 %v236_v22, %v185_v28  ;;  %v2827_v63 = vadd.f32 %v236_v22, %v187_v33  ;;  %v1117_v22 = vmul.f32 %v2721_v26, %v2626_v24  ;;  %v1119_v28 = vmul.f32 %v2733_v37, %v2621_v20 }
 0x695   :  { %v1120_v33 = vmul.f32 %v2739_v41, %v2639_v39  ;;  %v1124_v20 = vmul.f32 %v2763_v57, %v2660_v49  ;;  %v1127_v39 = vmul.f32 %v2781_v34, %v2671_v27 }
 0x696   :  { %v680_v36 = vpack.c.bf16 %v258_v58, %v256_v14  ;;  %v1162_v40 = vpack.c.bf16 %v2827_v63, %v2825_v7  ;;  %v1118_v14 = vmul.f32 %v2727_v61, %v2614_v12  ;;  %v1122_v58 = vmul.f32 %v2751_v45, %v2632_v29 }
 0x697   :  { %v241_v62 = vpop.permute.xlu0 %240  ;;  %v1123_v12 = vmul.f32 %v2757_v47, %v2649_v3  ;;  %v1125_v29 = vmul.f32 %v2769_v4, %v2666_v16  ;;  %v1129_v3 = vmul.f32 %v2793_v6, %v2685_v53 }
 0x698   :  { %1920 = vmatprep.mubr.bf16.mxu0 %v680_v36  ;;  %v2831_v44 = vadd.f32 %v241_v62, %v193_v2  ;;  %v260_v46 = vadd.f32 %v241_v62, %v191_v38  ;;  %v1121_v36 = vmul.f32 %v2745_v42, %v2643_v59  ;;  %v1128_v59 = vmul.f32 %v2787_v13, %v2681_v35  ;;  %v2871_v62 = vld [vmem:[#allocation2 + $0x10] sm:$0xff] }
 0x69b   :  { %v246_v48 = vpop.permute.xlu0 %245 }
 0x69c   :  { %v262_v54 = vadd.f32 %v246_v48, %v195_v50  ;;  %v2833_v32 = vadd.f32 %v246_v48, %v197_v19  ;;  %v2874_v48 = vld [vmem:[#allocation2] sm:$0xff] }
 0x69e   :  { %v681_v1 = vpack.c.bf16 %v262_v54, %v260_v46  ;;  %v1163_v52 = vpack.c.bf16 %v2833_v32, %v2831_v44 }
 0x6a0   :  { %1921 = vmatmul.mubr.bf16.gmra.mrb[24].mxu0 %v681_v1  ;;  %v2877_v1 = vld [vmem:[#allocation2 + $0x18] sm:$0xff] }
 0x6a1   :  { %1993 = vmatprep.mubr.bf16.mxu0 %v1160_v55 }
 0x726   :  { %v1918_v38 = vpop.f32.mrb[20].mxu0 }
 0x727   :  { %v1233_v2 = vsub.f32 %v2871_v62, %v1918_v38  ;;  %v716_v46 = vpop.f32.mrb[21].mxu0  ;;  %v2075_v38 = vld [vmem:[%s3215_s3 + $0x18] sm:$0xff]  }
 0x728   :  { %v1229_v50 = vsub.f32 %v2874_v48, %v716_v46  ;;  %v1919_v54 = vpop.f32.mrb[22].mxu0 }
 0x729   :  { %v1235_v19 = vsub.f32 %v2877_v1, %v1919_v54 }
 0x766   :  { %v1111_v11 = vpop.f32.mrb[18].mxu1 }
 0x767   :  { %v1112_v56 = vadd.f32 1e-09, %v1111_v11  ;;  %v1976_v10 = vpop.f32.mrb[19].mxu1  ;;  %v719_v11 = vpop.f32.mrb[23].mxu0 }
 0x769   :  { %2206 = vrcp.f32 %v1112_v56  ;;  %v2880_v56 = vld [vmem:[#allocation2 + $0x8] sm:$0xff] }
 0x76a   :  { %v1231_v10 = vsub.f32 %v2880_v56, %v719_v11 }
 0x773   :  { %v2207_v55 = vpop.eup %2206 }
 0x774   :  { %v1135_v24 = vrot.slane %v2207_v55, %v652_v5 }
 0x776   :  { %v1136_v5 = vmul.f32 %v1135_v24, %v1116_v21  ;;  %v1137_v49 = vmul.f32 %v1135_v24, %v1117_v22  ;;  %v1138_v51 = vmul.f32 %v1135_v24, %v1118_v14  ;;  %v1139_v26 = vmul.f32 %v1135_v24, %v1119_v28  ;;  %v1922_v22 = vpop.f32.mrb[24].mxu0  ;;  %v2895_v28 = vld [vmem:[#allocation2 + $0x30] sm:$0xff] }
 0x777   :  { %v1140_v16 = vmul.f32 %v1135_v24, %v1120_v33  ;;  %v1141_v61 = vmul.f32 %v1135_v24, %v1121_v36  ;;  %v1142_v37 = vmul.f32 %v1135_v24, %v1122_v58  ;;  %v1143_v27 = vmul.f32 %v1135_v24, %v1123_v12  ;;  %v732_v55 = vpop.f32.mrb[25].mxu0  ;;  %v2898_v33 = vld [vmem:[#allocation2 + $0x20] sm:$0xff]  ;;  %v1545_v12 = vld [vmem:[%s3217_s5 + $0x10] sm:$0xff] }
 0x778   :  { %v1152_v41 = vpack.c.bf16 %v1137_v49, %v1136_v5  ;;  %v1153_v42 = vpack.c.bf16 %v1139_v26, %v1138_v51  ;;  %v1144_v35 = vmul.f32 %v1135_v24, %v1124_v20  ;;  %v1145_v45 = vmul.f32 %v1135_v24, %v1125_v29  ;;  %v1923_v25 = vpop.f32.mrb[26].mxu0  ;;  %v1543_v36 = vld [vmem:[%s3217_s5] sm:$0xff]  ;;  %v2928_v26 = vld [vmem:[#allocation2 + $0x48] sm:$0xff] }
 0x779   :  { %v1154_v47 = vpack.c.bf16 %v1141_v61, %v1140_v16  ;;  %v1155_v53 = vpack.c.bf16 %v1143_v27, %v1142_v37  ;;  %v1146_v57 = vmul.f32 %v1135_v24, %v1126_v30  ;;  %v1147_v4 = vmul.f32 %v1135_v24, %v1127_v39  ;;  %v735_v63 = vpop.f32.mrb[27].mxu0  ;;  %1553 = vperm.xlu1 %2066, %v1543_v36   ;;  %v1546_v30 = vld [vmem:[%s3217_s5 + $0x18] sm:$0xff]  ;;  %v2925_v49 = vld [vmem:[#allocation2 + $0x40] sm:$0xff] }
 0x77a   :  { %1977 = vmatprep.subr.bf16.mxu0 %v1152_v41  ;;  %v1156_v31 = vpack.c.bf16 %v1145_v45, %v1144_v35  ;;  %v1148_v23 = vmul.f32 %v1135_v24, %v1128_v59  ;;  %v1149_v17 = vmul.f32 %v1135_v24, %v1129_v3  ;;  %v1150_v34 = vmul.f32 %v1135_v24, %v1130_v43  ;;  %v2919_v59 = vld [vmem:[#allocation2 + $0x50] sm:$0xff]  ;;  %v2922_v43 = vld [vmem:[#allocation2 + $0x58] sm:$0xff] }
 0x77b   :  { %1978 = vmatpush3.bf16.msra.mxu0 %v1152_v41  ;;  %v1157_v13 = vpack.c.bf16 %v1147_v4, %v1146_v57  ;;  %v1151_v6 = vmul.f32 %v1135_v24, %v1131_v9  ;;  %v2883_v14 = vpack.c.bf16 %v1235_v19, %v1233_v2  ;;  %v1245_v21 = vpack.c.bf16 %v1231_v10, %v1229_v50  ;;  %v1548_v24 = vld [vmem:[%s3217_s5 + $0x28] sm:$0xff]  ;;  %v2931_v35 = vld [vmem:[#allocation2 + $0x70] sm:$0xff]  ;;  %v2937_v4 = vld [vmem:[#allocation2 + $0x60] sm:$0xff]  ;;  %v1272_v2 = vpop.permute.xlu0 %1271 }
 0x77c   :  { %1979 = vmatprep.subr.bf16.mxu0 %v1153_v42  ;;  %v1158_v15 = vpack.c.bf16 %v1149_v17, %v1148_v23  ;;  %v1241_v58 = vsub.f32 %v2895_v28, %v1922_v22  ;;  %v1237_v60 = vsub.f32 %v2898_v33, %v732_v55  ;;  %v2940_v23 = vld [vmem:[#allocation2 + $0x68] sm:$0xff] }
 0x77d   :  { %v1159_v18 = vpack.c.bf16 %v1151_v6, %v1150_v34  ;;  %1563 = vperm.xlu1 %2066, %v1545_v12   ;;  %v2072_v6 = vld [vmem:[%s3215_s3] sm:$0xff]  }
 0x77f   :  { %1980 = vmatpush3.bf16.msra.mxu0 %v1153_v42  ;;  %v1277_v46 = vpop.permute.xlu0 %1276 }
 0x780   :  { %1981 = vmatprep.subr.bf16.mxu0 %v1154_v47 }
 0x781   :  { %1568 = vperm.xlu1 %2066, %v1546_v30  }
 0x783   :  { %1982 = vmatpush3.bf16.msra.mxu0 %v1154_v47  ;;  %v2934_v47 = vld [vmem:[#allocation2 + $0x78] sm:$0xff]  ;;  %v1282_v50 = vpop.permute.xlu0 %1281 }
 0x784   :  { %1983 = vmatprep.subr.bf16.mxu0 %v1155_v53 }
 0x785   :  { %1578 = vperm.xlu1 %2066, %v1548_v24  }
 0x787   :  { %1984 = vmatpush3.bf16.msra.mxu0 %v1155_v53  ;;  %v1287_v54 = vpop.permute.xlu0 %1286 }
 0x788   :  { %1985 = vmatprep.subr.bf16.mxu0 %v1156_v31 }
 0x78b   :  { %1986 = vmatpush3.bf16.msra.mxu0 %v1156_v31  ;;  %v1292_v19 = vpop.permute.xlu0 %1291 }
 0x78c   :  { %1987 = vmatprep.subr.bf16.mxu0 %v1157_v13 }
 0x78f   :  { %1988 = vmatpush3.bf16.msra.mxu0 %v1157_v13  ;;  %v1297_v12 = vpop.permute.xlu0 %1296 }
 0x790   :  { %1989 = vmatprep.subr.bf16.mxu0 %v1158_v15 }
 0x793   :  { %1990 = vmatpush3.bf16.msra.mxu0 %v1158_v15  ;;  %v2073_v15 = vld [vmem:[%s3215_s3 + $0x8] sm:$0xff]  }
 0x794   :  { %1991 = vmatprep.subr.bf16.mxu0 %v1159_v18 }
 0x797   :  { %1992 = vmatpush3.bf16.msra.mxu0 %v1159_v18  ;;  %v2074_v18 = vld [vmem:[%s3215_s3 + $0x10] sm:$0xff]  }
 0x79a   :  { %1994 = vmatmul.mubr.bf16.vlgmr.msra.gmra.mrb[28].mxu0 %v1161_v8  ;;  %v2901_v8 = vld [vmem:[#allocation2 + $0x38] sm:$0xff] }
 0x79b   :  { %1997 = vmatprep.mubr.bf16.mxu0 %v1162_v40  ;;  %v1243_v7 = vsub.f32 %v2901_v8, %v1923_v25  ;;  %v2904_v40 = vld [vmem:[#allocation2 + $0x28] sm:$0xff] }
 0x79c   :  { %v1239_v44 = vsub.f32 %v2904_v40, %v735_v63 }
 0x79d   :  { %v1251_v32 = vpack.c.bf16 %v1243_v7, %v1241_v58 }
 0x7a2   :  { %1998 = vmatmul.mubr.bf16.gmra.mrb[32].mxu0 %v1163_v52  ;;  %v1249_v52 = vpack.c.bf16 %v1239_v44, %v1237_v60 }
 0x7a3   :  { %1373 = vmatprep.mubr.bf16.mxu0 %v2291_v0 }
 0x86d   :  { %v1995_v20 = vpop.f32.mrb[28].mxu0 }
 0x86e   :  { %v1198_v29 = vpop.f32.mrb[29].mxu0  ;;  %v1234_v3 = vsub.f32 %v2919_v59, %v1995_v20 }
 0x86f   :  { %v1996_v39 = vpop.f32.mrb[30].mxu0  ;;  %v1230_v51 = vsub.f32 %v2925_v49, %v1198_v29 }
 0x870   :  { %v1236_v9 = vsub.f32 %v2922_v43, %v1996_v39  ;;  %v1201_v5 = vpop.f32.mrb[31].mxu0 }
 0x871   :  { %v1232_v16 = vsub.f32 %v2928_v26, %v1201_v5 }
 0x872   :  { %v1248_v61 = vpack.c.bf16 %v1236_v9, %v1234_v3 }
 0x873   :  { %v1246_v37 = vpack.c.bf16 %v1232_v16, %v1230_v51 }
 0x875   :  { %v1999_v27 = vpop.f32.mrb[32].mxu0  ;;  %1341 = vmatprep.subr.bf16.mxu0 %v1246_v37  ;;  %2049 = vmatprep.subr.bf16.mxu1 %v1246_v37 }
 0x876   :  { %v1214_v41 = vpop.f32.mrb[33].mxu0  ;;  %1342 = vmatpush1.bf16.msra.mxu0 %v1245_v21  ;;  %2053 = vmatpush1.bf16.msra.mxu1 %v1245_v21  ;;  %v1242_v45 = vsub.f32 %v2931_v35, %v1999_v27 }
 0x877   :  { %v2000_v42 = vpop.f32.mrb[34].mxu0  ;;  %1343 = vmatprep.subr.bf16.mxu0 %v1248_v61  ;;  %2050 = vmatprep.subr.bf16.mxu1 %v1248_v61  ;;  %v1238_v31 = vsub.f32 %v2937_v4, %v1214_v41  ;;  %v1302_v61 = vpop.permute.xlu0 %1301 }
 0x878   :  { %v1244_v53 = vsub.f32 %v2934_v47, %v2000_v42  ;;  %v1217_v57 = vpop.f32.mrb[35].mxu0 }
 0x879   :  { %v1240_v17 = vsub.f32 %v2940_v23, %v1217_v57 }
 0x87a   :  { %v1252_v34 = vpack.c.bf16 %v1244_v53, %v1242_v45  ;;  %1344 = vmatpush1.bf16.msra.mxu0 %v2883_v14  ;;  %2054 = vmatpush1.bf16.msra.mxu1 %v2883_v14 }
 0x87b   :  { %v1250_v13 = vpack.c.bf16 %v1240_v17, %v1238_v31  ;;  %v1307_v17 = vpop.permute.xlu0 %1306 }
 0x87d   :  { %1345 = vmatprep.subr.bf16.mxu0 %v1250_v13  ;;  %2051 = vmatprep.subr.bf16.mxu1 %v1250_v13 }
 0x87e   :  { %1346 = vmatpush1.bf16.msra.mxu0 %v1249_v52  ;;  %2055 = vmatpush1.bf16.msra.mxu1 %v1249_v52 }
 0x87f   :  { %1347 = vmatprep.subr.bf16.mxu0 %v1252_v34  ;;  %2052 = vmatprep.subr.bf16.mxu1 %v1252_v34 }
 0x882   :  { %1348 = vmatpush1.bf16.msra.mxu0 %v1251_v32  ;;  %2056 = vmatpush1.bf16.msra.mxu1 %v1251_v32 }
 0x885   :  { %1767 = vmatmul.mubr.msk.bf16.vlgmr.msra.gmra.mrb[36].mxu0 %vm101_vm0, %v2072_v6  ;;  %1768 = vmatmul.mubr.msk.bf16.vlgmr.msra.gmra.mrb[36].mxu1 %vm101_vm0, %v2073_v15 }
 0x886   :  { %1393 = vmatprep.mubr.bf16.mxu1 %v2291_v0 }
 0x88d   :  { %1769 = vmatmul.mubr.msk.bf16.gmra.mrb[40].mxu1 %vm101_vm0, %v2074_v18 }
 0x88e   :  { %1403 = vmatprep.mubr.bf16.mxu1 %v2291_v0 }
 0x895   :  { %1770 = vmatmul.mubr.msk.bf16.gmra.mrb[44].mxu1 %vm101_vm0, %v2075_v38 }
 0x958   :  { %v1375_v11 = vpop.f32.mrb[36].mxu0  ;;  %v1385_v10 = vpop.f32.mrb[36].mxu1 }
 0x959   :  { %v2963_v14 = vadd.f32 %v1375_v11, %v1272_v2  ;;  %v1377_v21 = vpop.f32.mrb[37].mxu0  ;;  %v1387_v22 = vpop.f32.mrb[37].mxu1  ;;  %v2969_v63 = vadd.f32 %v1385_v10, %v1282_v50  ;;  %v1607_v11 = vld [vmem:[%s3218_s6] sm:$0xff]  ;;  %v1609_v10 = vld [vmem:[%s3218_s6 + $0x10] sm:$0xff] }
 0x95a   :  { %v2965_v58 = vadd.f32 %v1377_v21, %v1272_v2  ;;  %v1379_v0 = vpop.f32.mrb[38].mxu0  ;;  %v1389_v55 = vpop.f32.mrb[38].mxu1  ;;  %v2971_v44 = vadd.f32 %v1387_v22, %v1282_v50  ;;  %v1550_v2 = vld [vmem:[%s3217_s5 + $0x38] sm:$0xff]  ;;  %v1611_v21 = vld [vmem:[%s3218_s6 + $0x20] sm:$0xff] }
 0x95b   :  { %v2967_v60 = vadd.f32 %v1379_v0, %v1277_v46  ;;  %v1381_v25 = vpop.f32.mrb[39].mxu0  ;;  %v1391_v7 = vpop.f32.mrb[39].mxu1  ;;  %v2979_v30 = vadd.f32 %v1389_v55, %v1287_v54  ;;  %v1610_v50 = vld [vmem:[%s3218_s6 + $0x18] sm:$0xff] }
 0x95c   :  { %v2973_v32 = vadd.f32 %v1381_v25, %v1277_v46  ;;  %v1414_v52 = vadd.f32 %v2965_v58, %v2963_v14  ;;  %v2981_v24 = vadd.f32 %v1391_v7, %v1287_v54  ;;  %v1420_v29 = vadd.f32 %v2971_v44, %v2969_v63  ;;  %v1608_v46 = vld [vmem:[%s3218_s6 + $0x8] sm:$0xff]  ;;  %v1549_v54 = vld [vmem:[%s3217_s5 + $0x30] sm:$0xff]  ;;  %v3035_v22 = vpop.permute.xlu1 %1553  ;;  %v3039_v55 = vpop.permute.xlu0 %1558 }
 0x95e   :  { %v1417_v36 = vadd.f32 %v2973_v32, %v2967_v60  ;;  %1415 = vadd.xlane.f32.xlu0 %v1414_v52  ;;  %v1423_v16 = vadd.f32 %v2981_v24, %v2979_v30 }
 0x960   :  { %v1395_v20 = vpop.f32.mrb[40].mxu1  ;;  %1418 = vadd.xlane.f32.xlu1 %v1417_v36  ;;  %v3037_v0 = vpop.permute.xlu1 %1563 }
 0x961   :  { %v1397_v39 = vpop.f32.mrb[41].mxu1  ;;  %v2985_v5 = vadd.f32 %v1395_v20, %v1292_v19  ;;  %v3043_v7 = vpop.permute.xlu0 %1573 }
 0x962   :  { %v1399_v3 = vpop.f32.mrb[42].mxu1  ;;  %1421 = vadd.xlane.f32.xlu0 %v1420_v29  ;;  %v2987_v51 = vadd.f32 %v1397_v39, %v1292_v19  ;;  %v1612_v19 = vld [vmem:[%s3218_s6 + $0x28] sm:$0xff] }
 0x963   :  { %v1401_v9 = vpop.f32.mrb[43].mxu1  ;;  %v2993_v27 = vadd.f32 %v1399_v3, %v1297_v12 }
 0x964   :  { %v1426_v37 = vadd.f32 %v2987_v51, %v2985_v5  ;;  %v2995_v41 = vadd.f32 %v1401_v9, %v1297_v12  ;;  %v3041_v25 = vpop.permute.xlu1 %1568 }
 0x966   :  { %1424 = vadd.xlane.f32.xlu0 %v1423_v16  ;;  %v1429_v13 = vadd.f32 %v2995_v41, %v2993_v27 }
 0x968   :  { %v1405_v42 = vpop.f32.mrb[44].mxu1  ;;  %v3045_v52 = vpop.permute.xlu1 %1578 }
 0x969   :  { %v2997_v45 = vadd.f32 %v1405_v42, %v1302_v61  ;;  %v1407_v53 = vpop.f32.mrb[45].mxu1 }
 0x96a   :  { %v2999_v57 = vadd.f32 %v1407_v53, %v1302_v61  ;;  %v1409_v31 = vpop.f32.mrb[46].mxu1  ;;  %1427 = vadd.xlane.f32.xlu0 %v1426_v37 }
 0x96b   :  { %v1411_v34 = vpop.f32.mrb[47].mxu1  ;;  %v3005_v15 = vadd.f32 %v1409_v31, %v1307_v17 }
 0x96c   :  { %v1432_v6 = vadd.f32 %v2999_v57, %v2997_v45  ;;  %v3007_v18 = vadd.f32 %v1411_v34, %v1307_v17 }
 0x96e   :  { %1433 = vadd.xlane.f32.xlu1 %v1432_v6  ;;  %1430 = vadd.xlane.f32.xlu0 %v1429_v13  ;;  %v1435_v38 = vadd.f32 %v3007_v18, %v3005_v15 }
 0x972   :  { %1436 = vadd.xlane.f32.xlu0 %v1435_v38 }
 0x97f   :  { %1588 = vperm.xlu1 %2066, %v1550_v2  }
 0x983   :  { %1622 = vperm.xlu1 %2066, %v1608_v46  }
 0x987   :  { %1632 = vperm.xlu1 %2066, %v1610_v50  }
 0x988   :  { %1583 = vperm.xlu0 %2065, %v1549_v54  }
 0x98b   :  { %1642 = vperm.xlu1 %2066, %v1612_v19  }
 0x98c   :  { %1617 = vperm.xlu0 %2065, %v1607_v11  }
 0x990   :  { %1627 = vperm.xlu0 %2065, %v1609_v10  }
 0x994   :  { %1637 = vperm.xlu0 %2065, %v1611_v21  }
 0x9eb   :  { %v1416_v36 = vpop.xlane.xlu0 %1415 }
 0x9ec   :  { %v1439_v12 = vmul.f32 0.00390625, %v1416_v36 }
 0x9ed   :  { %v1419_v20 = vpop.xlane.xlu1 %1418 }
 0x9ee   :  { %v3048_v29 = vsub.f32 %v2963_v14, %v1439_v12  ;;  %v3051_v39 = vsub.f32 %v2965_v58, %v1439_v12  ;;  %v1440_v3 = vmul.f32 0.00390625, %v1419_v20 }
 0x9ef   :  { %v1422_v9 = vpop.xlane.xlu0 %1421 }
 0x9f0   :  { %v1463_v16 = vmul.f32 %v3048_v29, %v3048_v29  ;;  %v1464_v61 = vmul.f32 %v3051_v39, %v3051_v39  ;;  %v3058_v37 = vsub.f32 %v2967_v60, %v1440_v3  ;;  %v3061_v42 = vsub.f32 %v2973_v32, %v1440_v3 }
 0x9f1   :  { %v1441_v53 = vmul.f32 0.00390625, %v1422_v9 }
 0x9f2   :  { %v1465_v14 = vmul.f32 %v3058_v37, %v3058_v37  ;;  %v1466_v58 = vmul.f32 %v3061_v42, %v3061_v42  ;;  %v1479_v31 = vadd.f32 %v1464_v61, %v1463_v16 }
 0x9f3   :  { %v3068_v17 = vsub.f32 %v2969_v63, %v1441_v53  ;;  %v3071_v34 = vsub.f32 %v2971_v44, %v1441_v53  ;;  %v1425_v13 = vpop.xlane.xlu0 %1424 }
 0x9f4   :  { %v1442_v60 = vmul.f32 0.00390625, %v1425_v13  ;;  %1480 = vadd.xlane.f32.xlu1 %v1479_v31  ;;  %v1482_v6 = vadd.f32 %v1466_v58, %v1465_v14 }
 0x9f5   :  { %v1467_v32 = vmul.f32 %v3068_v17, %v3068_v17  ;;  %v1468_v38 = vmul.f32 %v3071_v34, %v3071_v34 }
 0x9f6   :  { %v3078_v2 = vsub.f32 %v2979_v30, %v1442_v60  ;;  %v3081_v46 = vsub.f32 %v2981_v24, %v1442_v60  ;;  %1483 = vadd.xlane.f32.xlu0 %v1482_v6 }
 0x9f7   :  { %v1428_v63 = vpop.xlane.xlu0 %1427  ;;  %v1485_v44 = vadd.f32 %v1468_v38, %v1467_v32 }
 0x9f8   :  { %v1469_v50 = vmul.f32 %v3078_v2, %v3078_v2  ;;  %v1470_v54 = vmul.f32 %v3081_v46, %v3081_v46  ;;  %v1443_v19 = vmul.f32 0.00390625, %v1428_v63  ;;  %v1614_v63 = vld [vmem:[%s3218_s6 + $0x38] sm:$0xff] }
 0x9f9   :  { %1486 = vadd.xlane.f32.xlu1 %v1485_v44 }
 0x9fa   :  { %v3088_v11 = vsub.f32 %v2985_v5, %v1443_v19  ;;  %v3091_v30 = vsub.f32 %v2987_v51, %v1443_v19  ;;  %v1488_v10 = vadd.f32 %v1470_v54, %v1469_v50 }
 0x9fb   :  { %v1434_v24 = vpop.xlane.xlu1 %1433  ;;  %v1431_v21 = vpop.xlane.xlu0 %1430 }
 0x9fc   :  { %v1471_v36 = vmul.f32 %v3088_v11, %v3088_v11  ;;  %v1472_v12 = vmul.f32 %v3091_v30, %v3091_v30  ;;  %v1445_v20 = vmul.f32 0.00390625, %v1434_v24  ;;  %v1444_v3 = vmul.f32 0.00390625, %v1431_v21  ;;  %1489 = vadd.xlane.f32.xlu0 %v1488_v10 }
 0x9fe   :  { %v3098_v9 = vsub.f32 %v2997_v45, %v1445_v20  ;;  %v3101_v5 = vsub.f32 %v2999_v57, %v1445_v20  ;;  %v3104_v51 = vsub.f32 %v2993_v27, %v1444_v3  ;;  %v3107_v16 = vsub.f32 %v2995_v41, %v1444_v3 }
 0x9ff   :  { %v1437_v61 = vpop.xlane.xlu0 %1436  ;;  %v1491_v53 = vadd.f32 %v1472_v12, %v1471_v36 }
 0xa00   :  { %v1475_v14 = vmul.f32 %v3098_v9, %v3098_v9  ;;  %v1476_v58 = vmul.f32 %v3101_v5, %v3101_v5  ;;  %v1473_v45 = vmul.f32 %v3104_v51, %v3104_v51  ;;  %v1474_v57 = vmul.f32 %v3107_v16, %v3107_v16 }
 0xa01   :  { %v1446_v31 = vmul.f32 0.00390625, %v1437_v61  ;;  %1492 = vadd.xlane.f32.xlu1 %v1491_v53 }
 0xa02   :  { %v1497_v27 = vadd.f32 %v1476_v58, %v1475_v14  ;;  %v1494_v13 = vadd.f32 %v1474_v57, %v1473_v45 }
 0xa03   :  { %v3118_v41 = vsub.f32 %v3005_v15, %v1446_v31  ;;  %v3121_v60 = vsub.f32 %v3007_v18, %v1446_v31  ;;  %v1613_v15 = vld [vmem:[%s3218_s6 + $0x30] sm:$0xff]  ;;  %v3133_v18 = vpop.permute.xlu1 %1588  ;;  %s2295_s6 = smov [#allocation5]  }
 0xa04   :  { %1495 = vadd.xlane.f32.xlu0 %v1494_v13  ;;  %s1725_s20 = sshll.u32 %s2295_s6, 4  ;;  %s1726_s20 = int_to_ptr.vmem [resolvable:$true] %s1725_s20 }
 0xa05   :  { %v1477_v6 = vmul.f32 %v3118_v41, %v3118_v41  ;;  %v1478_v32 = vmul.f32 %v3121_v60, %v3121_v60  ;;  %1498 = vadd.xlane.f32.xlu1 %v1497_v27  ;;  %s2262_s21 = scalar_lea.vmem %s1726_s20, 2048  ;;  %p2267_p9 = scmp.lt.s32.totalorder %s1726_s20, %s1726_s20 }
 0xa06   :  { %p2263_p8 = scmp.ne.s32.totalorder %s1726_s20, %s2262_s21  ;;  %p2268_p10 = scmp.lt.s32.totalorder %s2262_s21, %s2262_s21 }
 0xa07   :  { %v1500_v38 = vadd.f32 %v1478_v32, %v1477_v6  ;;  %v3135_v44 = vpop.permute.xlu0 %1583  ;;  %v1623_v50 = vpop.permute.xlu1 %1622 }
 0xa08   :  { %p2269_p11 = por %p2268_p10, %p2267_p9 }
 0xa09   :  { %1501 = vadd.xlane.f32.xlu0 %v1500_v38 }
 0xa0a   :  { %p2270_p12 = pnand %p2269_p11, %p2263_p8 }
 0xa0b   :  { %v1618_v54 = vpop.permute.xlu0 %1617  ;;  %v3137_v19 = vpop.permute.xlu1 %1632 }
 0xa0f   :  { %v1628_v10 = vpop.permute.xlu0 %1627  ;;  %v3139_v24 = vpop.permute.xlu1 %1642 }
 0xa13   :  { %v3141_v21 = vpop.permute.xlu0 %1637 }
 0xa16   :  { %1652 = vperm.xlu1 %2066, %v1614_v63  }
 0xa1f   :  { %1647 = vperm.xlu0 %2065, %v1613_v15  }
 0xa81   :  { %v1481_v36 = vpop.xlane.xlu1 %1480 }
 0xa82   :  { %v1503_v12 = vmul.f32 0.00390625, %v1481_v36 }
 0xa83   :  { %v1484_v20 = vpop.xlane.xlu0 %1483 }
 0xa84   :  { %v1511_v3 = vadd.f32 1e-05, %v1503_v12  ;;  %v1504_v61 = vmul.f32 0.00390625, %v1484_v20 }
 0xa86   :  { %2208 = vrsqrt.f32 %v1511_v3  ;;  %v1512_v53 = vadd.f32 1e-05, %v1504_v61  ;;  %v1487_v14 = vpop.xlane.xlu1 %1486 }
 0xa87   :  { %v1505_v58 = vmul.f32 0.00390625, %v1487_v14 }
 0xa88   :  { %2210 = vrsqrt.f32 %v1512_v53 }
 0xa89   :  { %v1513_v45 = vadd.f32 1e-05, %v1505_v58  ;;  %v1490_v57 = vpop.xlane.xlu0 %1489 }
 0xa8a   :  { %v1506_v31 = vmul.f32 0.00390625, %v1490_v57 }
 0xa8b   :  { %2212 = vrsqrt.f32 %v1513_v45 }
 0xa8c   :  { %v1514_v27 = vadd.f32 1e-05, %v1506_v31 }
 0xa8e   :  { %2214 = vrsqrt.f32 %v1514_v27  ;;  %v1493_v13 = vpop.xlane.xlu1 %1492 }
 0xa8f   :  { %v1507_v6 = vmul.f32 0.00390625, %v1493_v13 }
 0xa90   :  { %v2209_v32 = vpop.eup %2208 }
 0xa91   :  { %v1527_v38 = vmul.f32 %v2209_v32, %v3048_v29  ;;  %v1528_v63 = vmul.f32 %v2209_v32, %v3051_v39  ;;  %v1515_v15 = vadd.f32 1e-05, %v1507_v6  ;;  %v1496_v36 = vpop.xlane.xlu0 %1495 }
 0xa92   :  { %v2211_v12 = vpop.eup %2210  ;;  %v1499_v20 = vpop.xlane.xlu1 %1498  ;;  %v1508_v3 = vmul.f32 0.00390625, %v1496_v36 }
 0xa93   :  { %v1591_v61 = vmul.f32 %v3035_v22, %v1527_v38  ;;  %v1592_v53 = vmul.f32 %v3035_v22, %v1528_v63  ;;  %v1529_v14 = vmul.f32 %v2211_v12, %v3058_v37  ;;  %v1530_v58 = vmul.f32 %v2211_v12, %v3061_v42 }
 0xa94   :  { %2216 = vrsqrt.f32 %v1515_v15  ;;  %v1509_v45 = vmul.f32 0.00390625, %v1499_v20  ;;  %v1516_v57 = vadd.f32 1e-05, %v1508_v3 }
 0xa95   :  { %v2213_v31 = vpop.eup %2212  ;;  %v1655_v29 = vadd.f32 %v1618_v54, %v1591_v61  ;;  %v1656_v27 = vadd.f32 %v1618_v54, %v1592_v53  ;;  %v1593_v39 = vmul.f32 %v3039_v55, %v1529_v14  ;;  %v1594_v13 = vmul.f32 %v3039_v55, %v1530_v58 }
 0xa96   :  { %v1531_v6 = vmul.f32 %v2213_v31, %v3068_v17  ;;  %v1532_v32 = vmul.f32 %v2213_v31, %v3071_v34  ;;  %v1517_v38 = vadd.f32 1e-05, %v1509_v45  ;;  %2218 = vrsqrt.f32 %v1516_v57  ;;  %v1502_v22 = vpop.xlane.xlu0 %1501 }
 0xa97   :  { %v1671_v37 = vmax.f32 %v1655_v29, 0.0  ;;  %v1672_v63 = vmax.f32 %v1656_v27, 0.0  ;;  %v1657_v42 = vadd.f32 %v1623_v50, %v1593_v39  ;;  %v1658_v15 = vadd.f32 %v1623_v50, %v1594_v13 }
 0xa98   :  { %v2215_v36 = vpop.eup %2214  ;;  %v1595_v12 = vmul.f32 %v3037_v0, %v1531_v6  ;;  %v1596_v54 = vmul.f32 %v3037_v0, %v1532_v32  ;;  %2220 = vrsqrt.f32 %v1517_v38  ;;  %v1510_v20 = vmul.f32 0.00390625, %v1502_v22 }
 0xa99   :  { %v1687_v55 = vadd.f32 %v2874_v48, %v1671_v37  ;;  %v1703_v17 = vadd.f32 %v2925_v49, %v1672_v63  ;;  %v1673_v3 = vmax.f32 %v1657_v42, 0.0  ;;  %v1674_v34 = vmax.f32 %v1658_v15, 0.0 }
 0xa9a   :  { %v1659_v61 = vadd.f32 %v1628_v10, %v1595_v12  ;;  %v1660_v53 = vadd.f32 %v1628_v10, %v1596_v54  ;;  %v1533_v14 = vmul.f32 %v2215_v36, %v3078_v2  ;;  %v1534_v58 = vmul.f32 %v2215_v36, %v3081_v46 }
 0xa9b   :  { %1695 = vst [vmem:[#allocation5] sm:$0xff] %v1687_v55  ;;  %1712 = vst [vmem:[#allocation5 + $0x40] sm:$0xff] %v1703_v17  ;;  %v1688_v50 = vadd.f32 %v2880_v56, %v1673_v3  ;;  %v1704_v0 = vadd.f32 %v2928_v26, %v1674_v34  ;;  %v1518_v45 = vadd.f32 1e-05, %v1510_v20 }
 0xa9c   :  { %v1675_v57 = vmax.f32 %v1659_v61, 0.0  ;;  %v1676_v31 = vmax.f32 %v1660_v53, 0.0  ;;  %v1597_v48 = vmul.f32 %v3041_v25, %v1533_v14  ;;  %v1598_v49 = vmul.f32 %v3041_v25, %v1534_v58  ;;  %v1653_v53 = vpop.permute.xlu1 %1652 }
 0xa9d   :  { %1696 = vst [vmem:[#allocation5 + $0x8] sm:$0xff] %v1688_v50  ;;  %1713 = vst [vmem:[#allocation5 + $0x48] sm:$0xff] %v1704_v0  ;;  %2222 = vrsqrt.f32 %v1518_v45 }
 0xa9e   :  { %v2217_v10 = vpop.eup %2216  ;;  %v1689_v2 = vadd.f32 %v2871_v62, %v1675_v57  ;;  %v1705_v46 = vadd.f32 %v2919_v59, %v1676_v31  ;;  %v1661_v29 = vadd.f32 %v3137_v19, %v1597_v48  ;;  %v1662_v56 = vadd.f32 %v3137_v19, %v1598_v49 }
 0xa9f   :  { %v1535_v26 = vmul.f32 %v2217_v10, %v3088_v11  ;;  %v1536_v27 = vmul.f32 %v2217_v10, %v3091_v30 }
 0xaa0   :  { %v2219_v39 = vpop.eup %2218  ;;  %1697 = vst [vmem:[#allocation5 + $0x10] sm:$0xff] %v1689_v2  ;;  %1714 = vst [vmem:[#allocation5 + $0x50] sm:$0xff] %v1705_v46  ;;  %v1677_v25 = vmax.f32 %v1661_v29, 0.0  ;;  %v1678_v13 = vmax.f32 %v1662_v56, 0.0 }
 0xaa1   :  { %v1599_v6 = vmul.f32 %v3043_v7, %v1535_v26  ;;  %v1600_v32 = vmul.f32 %v3043_v7, %v1536_v27  ;;  %v1537_v62 = vmul.f32 %v2219_v39, %v3104_v51  ;;  %v1538_v59 = vmul.f32 %v2219_v39, %v3107_v16 }
 0xaa2   :  { %v2221_v38 = vpop.eup %2220  ;;  %v1690_v19 = vadd.f32 %v2877_v1, %v1677_v25  ;;  %v1706_v11 = vadd.f32 %v2922_v43, %v1678_v13 }
 0xaa3   :  { %v1663_v30 = vadd.f32 %v3141_v21, %v1599_v6  ;;  %v1664_v22 = vadd.f32 %v3141_v21, %v1600_v32  ;;  %v1601_v37 = vmul.f32 %v3045_v52, %v1537_v62  ;;  %v1602_v63 = vmul.f32 %v3045_v52, %v1538_v59 }
 0xaa4   :  { %1698 = vst [vmem:[#allocation5 + $0x18] sm:$0xff] %v1690_v19  ;;  %1715 = vst [vmem:[#allocation5 + $0x58] sm:$0xff] %v1706_v11  ;;  %v1539_v7 = vmul.f32 %v2221_v38, %v3098_v9  ;;  %v1540_v51 = vmul.f32 %v2221_v38, %v3101_v5  ;;  %v1648_v9 = vpop.permute.xlu0 %1647 }
 0xaa5   :  { %v1679_v16 = vmax.f32 %v1663_v30, 0.0  ;;  %v1680_v42 = vmax.f32 %v1664_v22, 0.0  ;;  %v1665_v1 = vadd.f32 %v3139_v24, %v1601_v37  ;;  %v1666_v43 = vadd.f32 %v3139_v24, %v1602_v63 }
 0xaa6   :  { %v1603_v15 = vmul.f32 %v3135_v44, %v1539_v7  ;;  %v1604_v21 = vmul.f32 %v3135_v44, %v1540_v51 }
 0xaa7   :  { %v2223_v36 = vpop.eup %2222  ;;  %v1691_v12 = vadd.f32 %v2898_v33, %v1679_v16  ;;  %v1707_v52 = vadd.f32 %v2937_v4, %v1680_v42  ;;  %v1681_v54 = vmax.f32 %v1665_v1, 0.0  ;;  %v1682_v20 = vmax.f32 %v1666_v43, 0.0 }
 0xaa8   :  { %v1541_v5 = vmul.f32 %v2223_v36, %v3118_v41  ;;  %v1542_v55 = vmul.f32 %v2223_v36, %v3121_v60  ;;  %v1667_v17 = vadd.f32 %v1648_v9, %v1603_v15  ;;  %v1668_v3 = vadd.f32 %v1648_v9, %v1604_v21 }
 0xaa9   :  { %1699 = vst [vmem:[#allocation5 + $0x20] sm:$0xff] %v1691_v12  ;;  %1716 = vst [vmem:[#allocation5 + $0x60] sm:$0xff] %v1707_v52  ;;  %v1692_v24 = vadd.f32 %v2904_v40, %v1681_v54  ;;  %v1708_v44 = vadd.f32 %v2940_v23, %v1682_v20 }
 0xaaa   :  { %v1605_v34 = vmul.f32 %v3133_v18, %v1541_v5  ;;  %v1606_v33 = vmul.f32 %v3133_v18, %v1542_v55  ;;  %v1683_v4 = vmax.f32 %v1667_v17, 0.0  ;;  %v1684_v61 = vmax.f32 %v1668_v3, 0.0 }
 0xaab   :  { %1700 = vst [vmem:[#allocation5 + $0x28] sm:$0xff] %v1692_v24  ;;  %1717 = vst [vmem:[#allocation5 + $0x68] sm:$0xff] %v1708_v44 }
 0xaac   :  { %v1669_v41 = vadd.f32 %v1653_v53, %v1605_v34  ;;  %v1670_v14 = vadd.f32 %v1653_v53, %v1606_v33  ;;  %v1693_v60 = vadd.f32 %v2895_v28, %v1683_v4  ;;  %v1709_v58 = vadd.f32 %v2931_v35, %v1684_v61 }
 0xaae   :  { %v1685_v40 = vmax.f32 %v1669_v41, 0.0  ;;  %v1686_v50 = vmax.f32 %v1670_v14, 0.0  ;;  %1701 = vst [vmem:[#allocation5 + $0x30] sm:$0xff] %v1693_v60  ;;  %1718 = vst [vmem:[#allocation5 + $0x70] sm:$0xff] %v1709_v58 }
 0xab0   :  { %v1694_v23 = vadd.f32 %v2901_v8, %v1685_v40  ;;  %v1710_v18 = vadd.f32 %v2934_v47, %v1686_v50 }
 0xab2   :  { %1702 = vst [vmem:[#allocation5 + $0x38] sm:$0xff] %v1694_v23  ;;  %1719 = vst [vmem:[#allocation5 + $0x78] sm:$0xff] %v1710_v18 }
 0xab3   :  { %2273 = shalt.err (!%p2270_p12)
}
 0xab4   :  { %s2274_s24 = scalar_lea.hbm %s3219_s7, 2048 }
 0xab5   :  { %p2275_p13 = scmp.ne.s32.totalorder %s3219_s7, %s2274_s24  ;;  %p2278_p0 = scmp.lt.u32.totalorder %s2274_s24, %s3219_s7 }
 0xab7   :  { %p2280_p1 = pnand %p2278_p0, %p2275_p13 }
 0xab9   :  { %2283 = shalt.err (!%p2280_p1)
}
 0xaba   :  { %1731 = dma.vmem_to_hbm [thread:$0]  %s1726_s20, 2048, %s3219_s7, [#allocation4], %s2289_s11, %s2289_s11, %s2290_s12  }
 0xabb   :  { %2286 = dma.done.wait [#allocation4], 2048  }
 0xabc   :  { %2287 = vsyncadd [#allocation4], 4294965248 }
 0xabd   :  { %1735 = vsyncpa [#allocation3], 1 }
 0xabe   :  { %1736 = vsyncpa [#allocation4], 1 }

</bundles_post_ra>
